<compile_context>
chip_gen: v7x
topology: tpu7x:2x2x1
jax: 0.10.0
libtpu: 0.0.40
codegen_flags: <defaults>
</compile_context>

<pallas_src>
import functools

import jax
import jax.numpy as jnp
from jax.experimental import pallas as pl
from jax.experimental.pallas import tpu as pltpu


# ----------------------------- fused Pallas kernel ---------------------------

def _flash_cross_attn_kernel(*refs, heads, dim_head, has_ctx_proj, compute_dtype):
    if has_ctx_proj:
        (x_ref, c_ref, wc_ref, bc_ref, wq_ref, wkv_ref, wo_ref, bo_ref,
         o_ref, q_scr, m_scr, l_scr, acc_scr, o_slab) = refs
    else:
        (x_ref, c_ref, wq_ref, wkv_ref, wo_ref, bo_ref,
         o_ref, q_scr, m_scr, l_scr, acc_scr, o_slab) = refs
        wc_ref = bc_ref = None

    inner = heads * dim_head
    k_step = pl.program_id(2)

    # ---- per (batch, q-tile) init: Q projection + flash accumulators --------
    @pl.when(k_step == 0)
    def _init():
        x = x_ref[0]                                               # (bq, Dq)
        # Softmax scale is pre-folded into wq in the wrapper.
        q = jnp.dot(x, wq_ref[...], preferred_element_type=jnp.float32)
        q = q.astype(compute_dtype)                                # (bq, inner)
        for h in range(heads):
            q_scr[h] = q[:, h * dim_head:(h + 1) * dim_head]
        m_scr[...] = jnp.full_like(m_scr, -jnp.inf)
        l_scr[...] = jnp.zeros_like(l_scr)
        acc_scr[...] = jnp.zeros_like(acc_scr)

    # ---- per k-tile: optional context proj + fused K/V projection -----------
    c = c_ref[0]                                                   # (bk, Dc)
    if has_ctx_proj:
        c = (jnp.dot(c, wc_ref[...], preferred_element_type=jnp.float32)
             + bc_ref[...]).astype(compute_dtype)
    # wkv = [Wk | Wv]: context read from VMEM once for both K and V.
    kv = jnp.dot(c, wkv_ref[...], preferred_element_type=jnp.float32)
    kv = kv.astype(compute_dtype)                                  # (bk, 2*inner)

    # ---- online-softmax update, head axis leading in scratch ----------------
    for h in range(heads):
        lo = h * dim_head
        kh = kv[:, lo:lo + dim_head]                               # (bk, Dh)
        vh = kv[:, inner + lo:inner + lo + dim_head]               # (bk, Dh)
        qh = q_scr[h]                                              # (bq, Dh)

        # q @ k^T: contract the shared Dh axis directly (no transpose).
        s = jax.lax.dot_general(qh, kh, (((1,), (1,)), ((), ())),
                                preferred_element_type=jnp.float32)  # (bq, bk)

        m_prev = m_scr[h]
        m_new = jnp.maximum(m_prev, jnp.max(s, axis=-1, keepdims=True))
        alpha = jnp.exp(m_prev - m_new)                            # (bq, 1) f32
        p = jnp.exp(s - m_new)                                     # f32
        l_scr[h] = alpha * l_scr[h] + jnp.sum(p, axis=-1, keepdims=True)
        pv = jnp.dot(p.astype(compute_dtype), vh,
                     preferred_element_type=jnp.float32)           # (bq, Dh)
        acc_scr[h] = alpha * acc_scr[h] + pv
        m_scr[h] = m_new

    # ---- finalize: normalize, merge heads lane-dense, to_out projection -----
    @pl.when(k_step == pl.num_programs(2) - 1)
    def _finalize():
        for h in range(heads):
            oh = acc_scr[h] * pl.reciprocal(l_scr[h], approx=True)
            o_slab[:, h * dim_head:(h + 1) * dim_head] = oh.astype(compute_dtype)
        # to_out: Linear(inner -> query_dim); Dropout(p=0) is identity.
        out = (jnp.dot(o_slab[...], wo_ref[...],
                       preferred_element_type=jnp.float32) + bo_ref[...])
        o_ref[0] = out.astype(o_ref.dtype)


# --------------------------------- wrapper -----------------------------------

def _pick_block(n, preferred):
    """Largest block <= preferred that divides n; fall back to full extent."""
    b = min(n, preferred)
    while n % b:
        b -= 1
    if b != n and b % 8 != 0:   # respect the (8, 128) sublane rule
        b = n
    return b


def cross_attention(params, x, context=None, *, heads, dim_head,
                    block_q=128, block_k=128, compute_dtype=None):
    """Matches CrossAttention.forward (Dropout(p=0.0) / eval -> identity)."""
    out_dtype = x.dtype
    compute_dtype = jnp.dtype(x.dtype if compute_dtype is None else compute_dtype)

    B, Sq, Dq = x.shape
    inner = heads * dim_head
    scale = dim_head ** (-0.5)

    has_ctx_proj = (context is not None) and ("ctx_w" in params)
    if context is None:
        # Self-attention: x feeds both operands, but the q-tile and k-tile
        # windows are distinct, so there is no redundant whole-array DMA —
        # just the normal flash access pattern.
        context = x
    Sk, Dc = context.shape[1], context.shape[2]

    bq = _pick_block(Sq, block_q)
    bk = _pick_block(Sk, block_k)

    f32 = jnp.float32
    # One-time weight prep (XLA side): lane-dense [Din, Dout] layouts, softmax
    # scale folded into Wq, K/V fused into one [Dq, 2*inner] operand, weights
    # pre-cast to the MXU compute dtype; biases stay f32 (added post-accumulate).
    wq_t = (params["to_q"].astype(f32).T * scale).astype(compute_dtype)
    wkv_t = jnp.concatenate([params["to_k"].T, params["to_v"].T],
                            axis=1).astype(compute_dtype)
    wo_t = params["to_out_w"].T.astype(compute_dtype)
    bo = params["to_out_b"].astype(f32)

    x_in = x.astype(compute_dtype)
    c_in = context.astype(compute_dtype)

    # Grid-invariant weights: whole array resident in VMEM, single copy
    # (no per-step double-buffered DMA).
    weight_spec = pl.BlockSpec(memory_space=pltpu.MemorySpace.VMEM)

    operands = [x_in, c_in]
    in_specs = [
        pl.BlockSpec((1, bq, Dq), lambda b, i, k: (b, i, 0)),
        pl.BlockSpec((1, bk, Dc), lambda b, i, k: (b, k, 0)),
    ]
    if has_ctx_proj:
        operands += [params["ctx_w"].T.astype(compute_dtype),
                     params["ctx_b"].astype(f32)]
        in_specs += [weight_spec, weight_spec]
    operands += [wq_t, wkv_t, wo_t, bo]
    in_specs += [weight_spec] * 4

    kern = functools.partial(
        _flash_cross_attn_kernel, heads=heads, dim_head=dim_head,
        has_ctx_proj=has_ctx_proj, compute_dtype=compute_dtype)

    return pl.pallas_call(
        kern,
        out_shape=jax.ShapeDtypeStruct((B, Sq, Dq), out_dtype),
        grid=(B, Sq // bq, Sk // bk),
        in_specs=in_specs,
        out_specs=pl.BlockSpec((1, bq, Dq), lambda b, i, k: (b, i, 0)),
        scratch_shapes=[
            pltpu.VMEM((heads, bq, dim_head), compute_dtype),   # q, head-major
            pltpu.VMEM((heads, bq, 1), jnp.float32),            # running max m
            pltpu.VMEM((heads, bq, 1), jnp.float32),            # running sum l
            pltpu.VMEM((heads, bq, dim_head), jnp.float32),     # running acc
            pltpu.VMEM((bq, inner), compute_dtype),             # lane-dense head slab
        ],
        compiler_params=pltpu.CompilerParams(
            dimension_semantics=("parallel", "parallel", "arbitrary"),
            # Raise the 16/32 MiB scoped-VMEM defaults; tiles are chosen so
            # actual usage stays well inside v7x's 64 MiB physical VMEM.
            vmem_limit_bytes=64 * 1024 * 1024),
    )(*operands)


# --------------------------- parameters (PyTorch init) -----------------------

def init_params(key, query_dim, context_dim, heads, dim_head):
    inner = heads * dim_head
    ks = jax.random.split(key, 7)

    def lin_w(k, dout, din):
        bound = 1.0 / (din ** 0.5)
        return jax.random.uniform(k, (dout, din), jnp.float32, -bound, bound)

    params = {
        "to_q": lin_w(ks[0], inner, query_dim),
        "to_k": lin_w(ks[1], inner, query_dim),
        "to_v": lin_w(ks[2], inner, query_dim),
        "to_out_w": lin_w(ks[3], query_dim, inner),
        "to_out_b": jax.random.uniform(
            ks[4], (1, query_dim), jnp.float32,
            -1.0 / (inner ** 0.5), 1.0 / (inner ** 0.5)),
    }
    if context_dim != query_dim:
        params["ctx_w"] = lin_w(ks[5], query_dim, context_dim)
        params["ctx_b"] = jax.random.uniform(
            ks[6], (1, query_dim), jnp.float32,
            -1.0 / (context_dim ** 0.5), 1.0 / (context_dim ** 0.5))
    return params


# ------------------------------ pure-JAX reference ---------------------------

def cross_attention_ref(params, x, context, *, heads, dim_head):
    if context is None:
        context = x
    elif "ctx_w" in params:
        context = context @ params["ctx_w"].T + params["ctx_b"]
    q = x @ params["to_q"].T
    k = context @ params["to_k"].T
    v = context @ params["to_v"].T

    def split(t):
        b_, s_, _ = t.shape
        return t.reshape(b_, s_, heads, dim_head).transpose(0, 2, 1, 3)

    q, k, v = map(split, (q, k, v))
    sim = jnp.einsum("bhid,bhjd->bhij", q, k) * (dim_head ** (-0.5))
    attn = jax.nn.softmax(sim, axis=-1)
    o = jnp.einsum("bhij,bhjd->bhid", attn, v)
    o = o.transpose(0, 2, 1, 3).reshape(x.shape[0], x.shape[1], heads * dim_head)
    return o @ params["to_out_w"].T + params["to_out_b"]


# ----------------------------------- main ------------------------------------

if __name__ == "__main__":
    B, Sq, Sk = 2, 32, 24
    query_dim, context_dim = 32, 48
    heads, dim_head = 4, 16

    key = jax.random.PRNGKey(0)
    kx, kc, kp = jax.random.split(key, 3)
    x = jax.random.normal(kx, (B, Sq, query_dim), jnp.float32)
    ctx = jax.random.normal(kc, (B, Sk, context_dim), jnp.float32)
    params = init_params(kp, query_dim, context_dim, heads, dim_head)

    # Cross-attention, f32 compute, multi-tile flash grid (B, Sq/16, Sk/8) =
    # (2, 2, 3) so the online-softmax accumulation across k-tiles is exercised.
    out = cross_attention(params, x, ctx, heads=heads, dim_head=dim_head,
                          block_q=16, block_k=8)
    out = jax.block_until_ready(out)
    ref = cross_attention_ref(params, x, ctx, heads=heads, dim_head=dim_head)
    assert out.shape == (B, Sq, query_dim)
    # Tolerance covers the approx reciprocal + online-softmax reordering.
    assert jnp.allclose(out, ref, atol=5e-3, rtol=5e-3), "cross-attn mismatch"

    # Self-attention path (context=None -> context = x, no ctx projection).
    out_self = cross_attention(params, x, None, heads=heads, dim_head=dim_head,
                               block_q=16, block_k=16)
    out_self = jax.block_until_ready(out_self)
    ref_self = cross_attention_ref(params, x, None, heads=heads, dim_head=dim_head)
    assert jnp.allclose(out_self, ref_self, atol=5e-3, rtol=5e-3), "self-attn mismatch"

    # bf16 MXU-feed path (review item): loose tolerance for bf16 operands.
    out_bf16 = cross_attention(params, x, ctx, heads=heads, dim_head=dim_head,
                               block_q=16, block_k=8,
                               compute_dtype=jnp.bfloat16)
    out_bf16 = jax.block_until_ready(out_bf16)
    assert jnp.allclose(out_bf16, ref, atol=1e-1, rtol=1e-1), "bf16 path mismatch"

    print("KERNEL_OK")
</pallas_src>

<mosaic_0001>
module attributes {stable_mosaic.version = 11 : i64} {
  func.func @_flash_cross_attn_kernel(%arg0: i32, %arg1: i32, %arg2: i32, %arg3: memref<1x16x32xf32, #tpu.memory_space<vmem>>, %arg4: memref<1x8x48xf32, #tpu.memory_space<vmem>>, %arg5: memref<48x32xf32, #tpu.memory_space<vmem>>, %arg6: memref<1x32xf32, #tpu.memory_space<vmem>>, %arg7: memref<32x64xf32, #tpu.memory_space<vmem>>, %arg8: memref<32x128xf32, #tpu.memory_space<vmem>>, %arg9: memref<64x32xf32, #tpu.memory_space<vmem>>, %arg10: memref<1x32xf32, #tpu.memory_space<vmem>>, %arg11: memref<1x16x32xf32, #tpu.memory_space<vmem>>, %arg12: memref<4x16x16xf32, #tpu.memory_space<vmem>>, %arg13: memref<4x16x1xf32, #tpu.memory_space<vmem>>, %arg14: memref<4x16x1xf32, #tpu.memory_space<vmem>>, %arg15: memref<4x16x16xf32, #tpu.memory_space<vmem>>, %arg16: memref<16x64xf32, #tpu.memory_space<vmem>>) attributes {dimension_semantics = [#tpu.dimension_semantics<parallel>, #tpu.dimension_semantics<parallel>, #tpu.dimension_semantics<arbitrary>], iteration_bounds = array<i64: 2, 2, 3>, scalar_prefetch = 0 : i64, scratch_operands = 5 : i64, tpu.core_type = #tpu.core_type<tc>, window_params = [{transform_indices = @transform_0, window_bounds = array<i64: 1, 16, 32>}, {transform_indices = @transform_1, window_bounds = array<i64: 1, 8, 48>}, {pipeline_mode = #tpu.pipeline_mode<synchronous>, transform_indices = @transform_2, window_bounds = array<i64: 48, 32>}, {pipeline_mode = #tpu.pipeline_mode<synchronous>, transform_indices = @transform_3, window_bounds = array<i64: 1, 32>}, {pipeline_mode = #tpu.pipeline_mode<synchronous>, transform_indices = @transform_4, window_bounds = array<i64: 32, 64>}, {pipeline_mode = #tpu.pipeline_mode<synchronous>, transform_indices = @transform_5, window_bounds = array<i64: 32, 128>}, {pipeline_mode = #tpu.pipeline_mode<synchronous>, transform_indices = @transform_6, window_bounds = array<i64: 64, 32>}, {pipeline_mode = #tpu.pipeline_mode<synchronous>, transform_indices = @transform_7, window_bounds = array<i64: 1, 32>}, {transform_indices = @transform_8, window_bounds = array<i64: 1, 16, 32>}]} {
    %c0_i32 = arith.constant 0 : i32
    %0 = arith.cmpi eq, %arg2, %c0_i32 : i32
    %1 = arith.extui %0 : i1 to i32
    %c0_i32_0 = arith.constant 0 : i32
    %2 = arith.cmpi ne, %1, %c0_i32_0 : i32
    scf.if %2 {
      %c0_108 = arith.constant 0 : index
      %c0_109 = arith.constant 0 : index
      %c0_110 = arith.constant 0 : index
      %159 = vector.load %arg3[%c0_108, %c0_109, %c0_110] : memref<1x16x32xf32, #tpu.memory_space<vmem>>, vector<1x16x32xf32>
      %160 = vector.shape_cast %159 : vector<1x16x32xf32> to vector<16x32xf32>
      %c0_111 = arith.constant 0 : index
      %c0_112 = arith.constant 0 : index
      %161 = vector.load %arg7[%c0_111, %c0_112] : memref<32x64xf32, #tpu.memory_space<vmem>>, vector<32x64xf32>
      %cst_113 = arith.constant dense<0.000000e+00> : vector<16x64xf32>
      %162 = tpu.matmul %160, %161, %cst_113 {dimension_numbers = #tpu.dot_dimension_numbers<[1], [0], [0], [1], [0, 0, 1, 1], [], []>} : vector<16x32xf32>, vector<32x64xf32>, vector<16x64xf32> -> vector<16x64xf32>
      %163 = vector.extract_strided_slice %162 {offsets = [0, 0], sizes = [16, 16], strides = [1, 1]} : vector<16x64xf32> to vector<16x16xf32>
      %c0_114 = arith.constant 0 : index
      %c0_115 = arith.constant 0 : index
      %c0_116 = arith.constant 0 : index
      %164 = vector.load %arg12[%c0_114, %c0_115, %c0_116] : memref<4x16x16xf32, #tpu.memory_space<vmem>>, vector<1x16x16xf32>
      %165 = vector.shape_cast %164 : vector<1x16x16xf32> to vector<16x16xf32>
      %166 = vector.shape_cast %163 : vector<16x16xf32> to vector<1x16x16xf32>
      tpu.vector_store %arg12[%c0_114, %c0_115, %c0_116], %166 {strides = array<i32>} : memref<4x16x16xf32, #tpu.memory_space<vmem>>, vector<1x16x16xf32>,
      %167 = vector.extract_strided_slice %162 {offsets = [0, 16], sizes = [16, 16], strides = [1, 1]} : vector<16x64xf32> to vector<16x16xf32>
      %c1_117 = arith.constant 1 : index
      %c0_118 = arith.constant 0 : index
      %c0_119 = arith.constant 0 : index
      %168 = vector.load %arg12[%c1_117, %c0_118, %c0_119] : memref<4x16x16xf32, #tpu.memory_space<vmem>>, vector<1x16x16xf32>
      %169 = vector.shape_cast %168 : vector<1x16x16xf32> to vector<16x16xf32>
      %170 = vector.shape_cast %167 : vector<16x16xf32> to vector<1x16x16xf32>
      tpu.vector_store %arg12[%c1_117, %c0_118, %c0_119], %170 {strides = array<i32>} : memref<4x16x16xf32, #tpu.memory_space<vmem>>, vector<1x16x16xf32>,
      %171 = vector.extract_strided_slice %162 {offsets = [0, 32], sizes = [16, 16], strides = [1, 1]} : vector<16x64xf32> to vector<16x16xf32>
      %c2_120 = arith.constant 2 : index
      %c0_121 = arith.constant 0 : index
      %c0_122 = arith.constant 0 : index
      %172 = vector.load %arg12[%c2_120, %c0_121, %c0_122] : memref<4x16x16xf32, #tpu.memory_space<vmem>>, vector<1x16x16xf32>
      %173 = vector.shape_cast %172 : vector<1x16x16xf32> to vector<16x16xf32>
      %174 = vector.shape_cast %171 : vector<16x16xf32> to vector<1x16x16xf32>
      tpu.vector_store %arg12[%c2_120, %c0_121, %c0_122], %174 {strides = array<i32>} : memref<4x16x16xf32, #tpu.memory_space<vmem>>, vector<1x16x16xf32>,
      %175 = vector.extract_strided_slice %162 {offsets = [0, 48], sizes = [16, 16], strides = [1, 1]} : vector<16x64xf32> to vector<16x16xf32>
      %c3_123 = arith.constant 3 : index
      %c0_124 = arith.constant 0 : index
      %c0_125 = arith.constant 0 : index
      %176 = vector.load %arg12[%c3_123, %c0_124, %c0_125] : memref<4x16x16xf32, #tpu.memory_space<vmem>>, vector<1x16x16xf32>
      %177 = vector.shape_cast %176 : vector<1x16x16xf32> to vector<16x16xf32>
      %178 = vector.shape_cast %175 : vector<16x16xf32> to vector<1x16x16xf32>
      tpu.vector_store %arg12[%c3_123, %c0_124, %c0_125], %178 {strides = array<i32>} : memref<4x16x16xf32, #tpu.memory_space<vmem>>, vector<1x16x16xf32>,
      %cst_126 = arith.constant 0xFF800000 : f32
      %179 = vector.broadcast %cst_126 : f32 to vector<4x16x1xf32>
      %c0_127 = arith.constant 0 : index
      %c0_128 = arith.constant 0 : index
      %c0_129 = arith.constant 0 : index
      %180 = vector.load %arg13[%c0_127, %c0_128, %c0_129] : memref<4x16x1xf32, #tpu.memory_space<vmem>>, vector<4x16x1xf32>
      tpu.vector_store %arg13[%c0_127, %c0_128, %c0_129], %179 {strides = array<i32>} : memref<4x16x1xf32, #tpu.memory_space<vmem>>, vector<4x16x1xf32>,
      %cst_130 = arith.constant 0.000000e+00 : f32
      %181 = vector.broadcast %cst_130 : f32 to vector<4x16x1xf32>
      %c0_131 = arith.constant 0 : index
      %c0_132 = arith.constant 0 : index
      %c0_133 = arith.constant 0 : index
      %182 = vector.load %arg14[%c0_131, %c0_132, %c0_133] : memref<4x16x1xf32, #tpu.memory_space<vmem>>, vector<4x16x1xf32>
      tpu.vector_store %arg14[%c0_131, %c0_132, %c0_133], %181 {strides = array<i32>} : memref<4x16x1xf32, #tpu.memory_space<vmem>>, vector<4x16x1xf32>,
      %cst_134 = arith.constant 0.000000e+00 : f32
      %183 = vector.broadcast %cst_134 : f32 to vector<4x16x16xf32>
      %c0_135 = arith.constant 0 : index
      %c0_136 = arith.constant 0 : index
      %c0_137 = arith.constant 0 : index
      %184 = vector.load %arg15[%c0_135, %c0_136, %c0_137] : memref<4x16x16xf32, #tpu.memory_space<vmem>>, vector<4x16x16xf32>
      tpu.vector_store %arg15[%c0_135, %c0_136, %c0_137], %183 {strides = array<i32>} : memref<4x16x16xf32, #tpu.memory_space<vmem>>, vector<4x16x16xf32>,
    } else {
    }
    %c0 = arith.constant 0 : index
    %c0_1 = arith.constant 0 : index
    %c0_2 = arith.constant 0 : index
    %3 = vector.load %arg4[%c0, %c0_1, %c0_2] : memref<1x8x48xf32, #tpu.memory_space<vmem>>, vector<1x8x48xf32>
    %4 = vector.shape_cast %3 : vector<1x8x48xf32> to vector<8x48xf32>
    %c0_3 = arith.constant 0 : index
    %c0_4 = arith.constant 0 : index
    %5 = vector.load %arg5[%c0_3, %c0_4] : memref<48x32xf32, #tpu.memory_space<vmem>>, vector<48x32xf32>
    %cst = arith.constant dense<0.000000e+00> : vector<8x32xf32>
    %6 = tpu.matmul %4, %5, %cst {dimension_numbers = #tpu.dot_dimension_numbers<[1], [0], [0], [1], [0, 0, 1, 1], [], []>} : vector<8x48xf32>, vector<48x32xf32>, vector<8x32xf32> -> vector<8x32xf32>
    %c0_5 = arith.constant 0 : index
    %c0_6 = arith.constant 0 : index
    %7 = vector.load %arg6[%c0_5, %c0_6] : memref<1x32xf32, #tpu.memory_space<vmem>>, vector<1x32xf32>
    %8 = vector.broadcast %7 : vector<1x32xf32> to vector<8x32xf32>
    %9 = arith.addf %6, %8 : vector<8x32xf32>
    %c0_7 = arith.constant 0 : index
    %c0_8 = arith.constant 0 : index
    %10 = vector.load %arg8[%c0_7, %c0_8] : memref<32x128xf32, #tpu.memory_space<vmem>>, vector<32x128xf32>
    %cst_9 = arith.constant dense<0.000000e+00> : vector<8x128xf32>
    %11 = tpu.matmul %9, %10, %cst_9 {dimension_numbers = #tpu.dot_dimension_numbers<[1], [0], [0], [1], [0, 0, 1, 1], [], []>} : vector<8x32xf32>, vector<32x128xf32>, vector<8x128xf32> -> vector<8x128xf32>
    %12 = vector.extract_strided_slice %11 {offsets = [0, 0], sizes = [8, 16], strides = [1, 1]} : vector<8x128xf32> to vector<8x16xf32>
    %13 = vector.extract_strided_slice %11 {offsets = [0, 64], sizes = [8, 16], strides = [1, 1]} : vector<8x128xf32> to vector<8x16xf32>
    %c0_10 = arith.constant 0 : index
    %c0_11 = arith.constant 0 : index
    %c0_12 = arith.constant 0 : index
    %14 = vector.load %arg12[%c0_10, %c0_11, %c0_12] : memref<4x16x16xf32, #tpu.memory_space<vmem>>, vector<1x16x16xf32>
    %15 = vector.shape_cast %14 : vector<1x16x16xf32> to vector<16x16xf32>
    %cst_13 = arith.constant dense<0.000000e+00> : vector<16x8xf32>
    %16 = tpu.matmul %15, %12, %cst_13 {dimension_numbers = #tpu.dot_dimension_numbers<[1], [1], [0], [0], [0, 0, 1, 0], [], []>} : vector<16x16xf32>, vector<8x16xf32>, vector<16x8xf32> -> vector<16x8xf32>
    %c0_14 = arith.constant 0 : index
    %c0_15 = arith.constant 0 : index
    %c0_16 = arith.constant 0 : index
    %17 = vector.load %arg13[%c0_14, %c0_15, %c0_16] : memref<4x16x1xf32, #tpu.memory_space<vmem>>, vector<1x16x1xf32>
    %18 = vector.shape_cast %17 : vector<1x16x1xf32> to vector<16x1xf32>
    %cst_17 = arith.constant dense<0xFF800000> : vector<16xf32>
    %19 = vector.multi_reduction <maximumf>, %16, %cst_17 [1] : vector<16x8xf32> to vector<16xf32>
    %20 = vector.shape_cast %19 : vector<16xf32> to vector<16x1xf32>
    %21 = arith.maximumf %18, %20 : vector<16x1xf32>
    %22 = arith.subf %18, %21 : vector<16x1xf32>
    %23 = math.exp %22 : vector<16x1xf32>
    %24 = vector.broadcast %21 : vector<16x1xf32> to vector<16x8xf32>
    %25 = arith.subf %16, %24 : vector<16x8xf32>
    %26 = math.exp %25 : vector<16x8xf32>
    %c0_18 = arith.constant 0 : index
    %c0_19 = arith.constant 0 : index
    %c0_20 = arith.constant 0 : index
    %27 = vector.load %arg14[%c0_18, %c0_19, %c0_20] : memref<4x16x1xf32, #tpu.memory_space<vmem>>, vector<1x16x1xf32>
    %28 = vector.shape_cast %27 : vector<1x16x1xf32> to vector<16x1xf32>
    %29 = arith.mulf %23, %28 : vector<16x1xf32>
    %cst_21 = arith.constant dense<0.000000e+00> : vector<16xf32>
    %30 = vector.multi_reduction <add>, %26, %cst_21 [1] : vector<16x8xf32> to vector<16xf32>
    %31 = vector.shape_cast %30 : vector<16xf32> to vector<16x1xf32>
    %32 = arith.addf %29, %31 : vector<16x1xf32>
    %c0_22 = arith.constant 0 : index
    %c0_23 = arith.constant 0 : index
    %c0_24 = arith.constant 0 : index
    %33 = vector.load %arg14[%c0_22, %c0_23, %c0_24] : memref<4x16x1xf32, #tpu.memory_space<vmem>>, vector<1x16x1xf32>
    %34 = vector.shape_cast %33 : vector<1x16x1xf32> to vector<16x1xf32>
    %35 = vector.shape_cast %32 : vector<16x1xf32> to vector<1x16x1xf32>
    tpu.vector_store %arg14[%c0_22, %c0_23, %c0_24], %35 {strides = array<i32>} : memref<4x16x1xf32, #tpu.memory_space<vmem>>, vector<1x16x1xf32>,
    %cst_25 = arith.constant dense<0.000000e+00> : vector<16x16xf32>
    %36 = tpu.matmul %26, %13, %cst_25 {dimension_numbers = #tpu.dot_dimension_numbers<[1], [0], [0], [1], [0, 0, 1, 1], [], []>} : vector<16x8xf32>, vector<8x16xf32>, vector<16x16xf32> -> vector<16x16xf32>
    %c0_26 = arith.constant 0 : index
    %c0_27 = arith.constant 0 : index
    %c0_28 = arith.constant 0 : index
    %37 = vector.load %arg15[%c0_26, %c0_27, %c0_28] : memref<4x16x16xf32, #tpu.memory_space<vmem>>, vector<1x16x16xf32>
    %38 = vector.shape_cast %37 : vector<1x16x16xf32> to vector<16x16xf32>
    %39 = vector.broadcast %23 : vector<16x1xf32> to vector<16x16xf32>
    %40 = arith.mulf %39, %38 : vector<16x16xf32>
    %41 = arith.addf %40, %36 : vector<16x16xf32>
    %c0_29 = arith.constant 0 : index
    %c0_30 = arith.constant 0 : index
    %c0_31 = arith.constant 0 : index
    %42 = vector.load %arg15[%c0_29, %c0_30, %c0_31] : memref<4x16x16xf32, #tpu.memory_space<vmem>>, vector<1x16x16xf32>
    %43 = vector.shape_cast %42 : vector<1x16x16xf32> to vector<16x16xf32>
    %44 = vector.shape_cast %41 : vector<16x16xf32> to vector<1x16x16xf32>
    tpu.vector_store %arg15[%c0_29, %c0_30, %c0_31], %44 {strides = array<i32>} : memref<4x16x16xf32, #tpu.memory_space<vmem>>, vector<1x16x16xf32>,
    %c0_32 = arith.constant 0 : index
    %c0_33 = arith.constant 0 : index
    %c0_34 = arith.constant 0 : index
    %45 = vector.load %arg13[%c0_32, %c0_33, %c0_34] : memref<4x16x1xf32, #tpu.memory_space<vmem>>, vector<1x16x1xf32>
    %46 = vector.shape_cast %45 : vector<1x16x1xf32> to vector<16x1xf32>
    %47 = vector.shape_cast %21 : vector<16x1xf32> to vector<1x16x1xf32>
    tpu.vector_store %arg13[%c0_32, %c0_33, %c0_34], %47 {strides = array<i32>} : memref<4x16x1xf32, #tpu.memory_space<vmem>>, vector<1x16x1xf32>,
    %48 = vector.extract_strided_slice %11 {offsets = [0, 16], sizes = [8, 16], strides = [1, 1]} : vector<8x128xf32> to vector<8x16xf32>
    %49 = vector.extract_strided_slice %11 {offsets = [0, 80], sizes = [8, 16], strides = [1, 1]} : vector<8x128xf32> to vector<8x16xf32>
    %c1 = arith.constant 1 : index
    %c0_35 = arith.constant 0 : index
    %c0_36 = arith.constant 0 : index
    %50 = vector.load %arg12[%c1, %c0_35, %c0_36] : memref<4x16x16xf32, #tpu.memory_space<vmem>>, vector<1x16x16xf32>
    %51 = vector.shape_cast %50 : vector<1x16x16xf32> to vector<16x16xf32>
    %cst_37 = arith.constant dense<0.000000e+00> : vector<16x8xf32>
    %52 = tpu.matmul %51, %48, %cst_37 {dimension_numbers = #tpu.dot_dimension_numbers<[1], [1], [0], [0], [0, 0, 1, 0], [], []>} : vector<16x16xf32>, vector<8x16xf32>, vector<16x8xf32> -> vector<16x8xf32>
    %c1_38 = arith.constant 1 : index
    %c0_39 = arith.constant 0 : index
    %c0_40 = arith.constant 0 : index
    %53 = vector.load %arg13[%c1_38, %c0_39, %c0_40] : memref<4x16x1xf32, #tpu.memory_space<vmem>>, vector<1x16x1xf32>
    %54 = vector.shape_cast %53 : vector<1x16x1xf32> to vector<16x1xf32>
    %cst_41 = arith.constant dense<0xFF800000> : vector<16xf32>
    %55 = vector.multi_reduction <maximumf>, %52, %cst_41 [1] : vector<16x8xf32> to vector<16xf32>
    %56 = vector.shape_cast %55 : vector<16xf32> to vector<16x1xf32>
    %57 = arith.maximumf %54, %56 : vector<16x1xf32>
    %58 = arith.subf %54, %57 : vector<16x1xf32>
    %59 = math.exp %58 : vector<16x1xf32>
    %60 = vector.broadcast %57 : vector<16x1xf32> to vector<16x8xf32>
    %61 = arith.subf %52, %60 : vector<16x8xf32>
    %62 = math.exp %61 : vector<16x8xf32>
    %c1_42 = arith.constant 1 : index
    %c0_43 = arith.constant 0 : index
    %c0_44 = arith.constant 0 : index
    %63 = vector.load %arg14[%c1_42, %c0_43, %c0_44] : memref<4x16x1xf32, #tpu.memory_space<vmem>>, vector<1x16x1xf32>
    %64 = vector.shape_cast %63 : vector<1x16x1xf32> to vector<16x1xf32>
    %65 = arith.mulf %59, %64 : vector<16x1xf32>
    %cst_45 = arith.constant dense<0.000000e+00> : vector<16xf32>
    %66 = vector.multi_reduction <add>, %62, %cst_45 [1] : vector<16x8xf32> to vector<16xf32>
    %67 = vector.shape_cast %66 : vector<16xf32> to vector<16x1xf32>
    %68 = arith.addf %65, %67 : vector<16x1xf32>
    %c1_46 = arith.constant 1 : index
    %c0_47 = arith.constant 0 : index
    %c0_48 = arith.constant 0 : index
    %69 = vector.load %arg14[%c1_46, %c0_47, %c0_48] : memref<4x16x1xf32, #tpu.memory_space<vmem>>, vector<1x16x1xf32>
    %70 = vector.shape_cast %69 : vector<1x16x1xf32> to vector<16x1xf32>
    %71 = vector.shape_cast %68 : vector<16x1xf32> to vector<1x16x1xf32>
    tpu.vector_store %arg14[%c1_46, %c0_47, %c0_48], %71 {strides = array<i32>} : memref<4x16x1xf32, #tpu.memory_space<vmem>>, vector<1x16x1xf32>,
    %cst_49 = arith.constant dense<0.000000e+00> : vector<16x16xf32>
    %72 = tpu.matmul %62, %49, %cst_49 {dimension_numbers = #tpu.dot_dimension_numbers<[1], [0], [0], [1], [0, 0, 1, 1], [], []>} : vector<16x8xf32>, vector<8x16xf32>, vector<16x16xf32> -> vector<16x16xf32>
    %c1_50 = arith.constant 1 : index
    %c0_51 = arith.constant 0 : index
    %c0_52 = arith.constant 0 : index
    %73 = vector.load %arg15[%c1_50, %c0_51, %c0_52] : memref<4x16x16xf32, #tpu.memory_space<vmem>>, vector<1x16x16xf32>
    %74 = vector.shape_cast %73 : vector<1x16x16xf32> to vector<16x16xf32>
    %75 = vector.broadcast %59 : vector<16x1xf32> to vector<16x16xf32>
    %76 = arith.mulf %75, %74 : vector<16x16xf32>
    %77 = arith.addf %76, %72 : vector<16x16xf32>
    %c1_53 = arith.constant 1 : index
    %c0_54 = arith.constant 0 : index
    %c0_55 = arith.constant 0 : index
    %78 = vector.load %arg15[%c1_53, %c0_54, %c0_55] : memref<4x16x16xf32, #tpu.memory_space<vmem>>, vector<1x16x16xf32>
    %79 = vector.shape_cast %78 : vector<1x16x16xf32> to vector<16x16xf32>
    %80 = vector.shape_cast %77 : vector<16x16xf32> to vector<1x16x16xf32>
    tpu.vector_store %arg15[%c1_53, %c0_54, %c0_55], %80 {strides = array<i32>} : memref<4x16x16xf32, #tpu.memory_space<vmem>>, vector<1x16x16xf32>,
    %c1_56 = arith.constant 1 : index
    %c0_57 = arith.constant 0 : index
    %c0_58 = arith.constant 0 : index
    %81 = vector.load %arg13[%c1_56, %c0_57, %c0_58] : memref<4x16x1xf32, #tpu.memory_space<vmem>>, vector<1x16x1xf32>
    %82 = vector.shape_cast %81 : vector<1x16x1xf32> to vector<16x1xf32>
    %83 = vector.shape_cast %57 : vector<16x1xf32> to vector<1x16x1xf32>
    tpu.vector_store %arg13[%c1_56, %c0_57, %c0_58], %83 {strides = array<i32>} : memref<4x16x1xf32, #tpu.memory_space<vmem>>, vector<1x16x1xf32>,
    %84 = vector.extract_strided_slice %11 {offsets = [0, 32], sizes = [8, 16], strides = [1, 1]} : vector<8x128xf32> to vector<8x16xf32>
    %85 = vector.extract_strided_slice %11 {offsets = [0, 96], sizes = [8, 16], strides = [1, 1]} : vector<8x128xf32> to vector<8x16xf32>
    %c2 = arith.constant 2 : index
    %c0_59 = arith.constant 0 : index
    %c0_60 = arith.constant 0 : index
    %86 = vector.load %arg12[%c2, %c0_59, %c0_60] : memref<4x16x16xf32, #tpu.memory_space<vmem>>, vector<1x16x16xf32>
    %87 = vector.shape_cast %86 : vector<1x16x16xf32> to vector<16x16xf32>
    %cst_61 = arith.constant dense<0.000000e+00> : vector<16x8xf32>
    %88 = tpu.matmul %87, %84, %cst_61 {dimension_numbers = #tpu.dot_dimension_numbers<[1], [1], [0], [0], [0, 0, 1, 0], [], []>} : vector<16x16xf32>, vector<8x16xf32>, vector<16x8xf32> -> vector<16x8xf32>
    %c2_62 = arith.constant 2 : index
    %c0_63 = arith.constant 0 : index
    %c0_64 = arith.constant 0 : index
    %89 = vector.load %arg13[%c2_62, %c0_63, %c0_64] : memref<4x16x1xf32, #tpu.memory_space<vmem>>, vector<1x16x1xf32>
    %90 = vector.shape_cast %89 : vector<1x16x1xf32> to vector<16x1xf32>
    %cst_65 = arith.constant dense<0xFF800000> : vector<16xf32>
    %91 = vector.multi_reduction <maximumf>, %88, %cst_65 [1] : vector<16x8xf32> to vector<16xf32>
    %92 = vector.shape_cast %91 : vector<16xf32> to vector<16x1xf32>
    %93 = arith.maximumf %90, %92 : vector<16x1xf32>
    %94 = arith.subf %90, %93 : vector<16x1xf32>
    %95 = math.exp %94 : vector<16x1xf32>
    %96 = vector.broadcast %93 : vector<16x1xf32> to vector<16x8xf32>
    %97 = arith.subf %88, %96 : vector<16x8xf32>
    %98 = math.exp %97 : vector<16x8xf32>
    %c2_66 = arith.constant 2 : index
    %c0_67 = arith.constant 0 : index
    %c0_68 = arith.constant 0 : index
    %99 = vector.load %arg14[%c2_66, %c0_67, %c0_68] : memref<4x16x1xf32, #tpu.memory_space<vmem>>, vector<1x16x1xf32>
    %100 = vector.shape_cast %99 : vector<1x16x1xf32> to vector<16x1xf32>
    %101 = arith.mulf %95, %100 : vector<16x1xf32>
    %cst_69 = arith.constant dense<0.000000e+00> : vector<16xf32>
    %102 = vector.multi_reduction <add>, %98, %cst_69 [1] : vector<16x8xf32> to vector<16xf32>
    %103 = vector.shape_cast %102 : vector<16xf32> to vector<16x1xf32>
    %104 = arith.addf %101, %103 : vector<16x1xf32>
    %c2_70 = arith.constant 2 : index
    %c0_71 = arith.constant 0 : index
    %c0_72 = arith.constant 0 : index
    %105 = vector.load %arg14[%c2_70, %c0_71, %c0_72] : memref<4x16x1xf32, #tpu.memory_space<vmem>>, vector<1x16x1xf32>
    %106 = vector.shape_cast %105 : vector<1x16x1xf32> to vector<16x1xf32>
    %107 = vector.shape_cast %104 : vector<16x1xf32> to vector<1x16x1xf32>
    tpu.vector_store %arg14[%c2_70, %c0_71, %c0_72], %107 {strides = array<i32>} : memref<4x16x1xf32, #tpu.memory_space<vmem>>, vector<1x16x1xf32>,
    %cst_73 = arith.constant dense<0.000000e+00> : vector<16x16xf32>
    %108 = tpu.matmul %98, %85, %cst_73 {dimension_numbers = #tpu.dot_dimension_numbers<[1], [0], [0], [1], [0, 0, 1, 1], [], []>} : vector<16x8xf32>, vector<8x16xf32>, vector<16x16xf32> -> vector<16x16xf32>
    %c2_74 = arith.constant 2 : index
    %c0_75 = arith.constant 0 : index
    %c0_76 = arith.constant 0 : index
    %109 = vector.load %arg15[%c2_74, %c0_75, %c0_76] : memref<4x16x16xf32, #tpu.memory_space<vmem>>, vector<1x16x16xf32>
    %110 = vector.shape_cast %109 : vector<1x16x16xf32> to vector<16x16xf32>
    %111 = vector.broadcast %95 : vector<16x1xf32> to vector<16x16xf32>
    %112 = arith.mulf %111, %110 : vector<16x16xf32>
    %113 = arith.addf %112, %108 : vector<16x16xf32>
    %c2_77 = arith.constant 2 : index
    %c0_78 = arith.constant 0 : index
    %c0_79 = arith.constant 0 : index
    %114 = vector.load %arg15[%c2_77, %c0_78, %c0_79] : memref<4x16x16xf32, #tpu.memory_space<vmem>>, vector<1x16x16xf32>
    %115 = vector.shape_cast %114 : vector<1x16x16xf32> to vector<16x16xf32>
    %116 = vector.shape_cast %113 : vector<16x16xf32> to vector<1x16x16xf32>
    tpu.vector_store %arg15[%c2_77, %c0_78, %c0_79], %116 {strides = array<i32>} : memref<4x16x16xf32, #tpu.memory_space<vmem>>, vector<1x16x16xf32>,
    %c2_80 = arith.constant 2 : index
    %c0_81 = arith.constant 0 : index
    %c0_82 = arith.constant 0 : index
    %117 = vector.load %arg13[%c2_80, %c0_81, %c0_82] : memref<4x16x1xf32, #tpu.memory_space<vmem>>, vector<1x16x1xf32>
    %118 = vector.shape_cast %117 : vector<1x16x1xf32> to vector<16x1xf32>
    %119 = vector.shape_cast %93 : vector<16x1xf32> to vector<1x16x1xf32>
    tpu.vector_store %arg13[%c2_80, %c0_81, %c0_82], %119 {strides = array<i32>} : memref<4x16x1xf32, #tpu.memory_space<vmem>>, vector<1x16x1xf32>,
    %120 = vector.extract_strided_slice %11 {offsets = [0, 48], sizes = [8, 16], strides = [1, 1]} : vector<8x128xf32> to vector<8x16xf32>
    %121 = vector.extract_strided_slice %11 {offsets = [0, 112], sizes = [8, 16], strides = [1, 1]} : vector<8x128xf32> to vector<8x16xf32>
    %c3 = arith.constant 3 : index
    %c0_83 = arith.constant 0 : index
    %c0_84 = arith.constant 0 : index
    %122 = vector.load %arg12[%c3, %c0_83, %c0_84] : memref<4x16x16xf32, #tpu.memory_space<vmem>>, vector<1x16x16xf32>
    %123 = vector.shape_cast %122 : vector<1x16x16xf32> to vector<16x16xf32>
    %cst_85 = arith.constant dense<0.000000e+00> : vector<16x8xf32>
    %124 = tpu.matmul %123, %120, %cst_85 {dimension_numbers = #tpu.dot_dimension_numbers<[1], [1], [0], [0], [0, 0, 1, 0], [], []>} : vector<16x16xf32>, vector<8x16xf32>, vector<16x8xf32> -> vector<16x8xf32>
    %c3_86 = arith.constant 3 : index
    %c0_87 = arith.constant 0 : index
    %c0_88 = arith.constant 0 : index
    %125 = vector.load %arg13[%c3_86, %c0_87, %c0_88] : memref<4x16x1xf32, #tpu.memory_space<vmem>>, vector<1x16x1xf32>
    %126 = vector.shape_cast %125 : vector<1x16x1xf32> to vector<16x1xf32>
    %cst_89 = arith.constant dense<0xFF800000> : vector<16xf32>
    %127 = vector.multi_reduction <maximumf>, %124, %cst_89 [1] : vector<16x8xf32> to vector<16xf32>
    %128 = vector.shape_cast %127 : vector<16xf32> to vector<16x1xf32>
    %129 = arith.maximumf %126, %128 : vector<16x1xf32>
    %130 = arith.subf %126, %129 : vector<16x1xf32>
    %131 = math.exp %130 : vector<16x1xf32>
    %132 = vector.broadcast %129 : vector<16x1xf32> to vector<16x8xf32>
    %133 = arith.subf %124, %132 : vector<16x8xf32>
    %134 = math.exp %133 : vector<16x8xf32>
    %c3_90 = arith.constant 3 : index
    %c0_91 = arith.constant 0 : index
    %c0_92 = arith.constant 0 : index
    %135 = vector.load %arg14[%c3_90, %c0_91, %c0_92] : memref<4x16x1xf32, #tpu.memory_space<vmem>>, vector<1x16x1xf32>
    %136 = vector.shape_cast %135 : vector<1x16x1xf32> to vector<16x1xf32>
    %137 = arith.mulf %131, %136 : vector<16x1xf32>
    %cst_93 = arith.constant dense<0.000000e+00> : vector<16xf32>
    %138 = vector.multi_reduction <add>, %134, %cst_93 [1] : vector<16x8xf32> to vector<16xf32>
    %139 = vector.shape_cast %138 : vector<16xf32> to vector<16x1xf32>
    %140 = arith.addf %137, %139 : vector<16x1xf32>
    %c3_94 = arith.constant 3 : index
    %c0_95 = arith.constant 0 : index
    %c0_96 = arith.constant 0 : index
    %141 = vector.load %arg14[%c3_94, %c0_95, %c0_96] : memref<4x16x1xf32, #tpu.memory_space<vmem>>, vector<1x16x1xf32>
    %142 = vector.shape_cast %141 : vector<1x16x1xf32> to vector<16x1xf32>
    %143 = vector.shape_cast %140 : vector<16x1xf32> to vector<1x16x1xf32>
    tpu.vector_store %arg14[%c3_94, %c0_95, %c0_96], %143 {strides = array<i32>} : memref<4x16x1xf32, #tpu.memory_space<vmem>>, vector<1x16x1xf32>,
    %cst_97 = arith.constant dense<0.000000e+00> : vector<16x16xf32>
    %144 = tpu.matmul %134, %121, %cst_97 {dimension_numbers = #tpu.dot_dimension_numbers<[1], [0], [0], [1], [0, 0, 1, 1], [], []>} : vector<16x8xf32>, vector<8x16xf32>, vector<16x16xf32> -> vector<16x16xf32>
    %c3_98 = arith.constant 3 : index
    %c0_99 = arith.constant 0 : index
    %c0_100 = arith.constant 0 : index
    %145 = vector.load %arg15[%c3_98, %c0_99, %c0_100] : memref<4x16x16xf32, #tpu.memory_space<vmem>>, vector<1x16x16xf32>
    %146 = vector.shape_cast %145 : vector<1x16x16xf32> to vector<16x16xf32>
    %147 = vector.broadcast %131 : vector<16x1xf32> to vector<16x16xf32>
    %148 = arith.mulf %147, %146 : vector<16x16xf32>
    %149 = arith.addf %148, %144 : vector<16x16xf32>
    %c3_101 = arith.constant 3 : index
    %c0_102 = arith.constant 0 : index
    %c0_103 = arith.constant 0 : index
    %150 = vector.load %arg15[%c3_101, %c0_102, %c0_103] : memref<4x16x16xf32, #tpu.memory_space<vmem>>, vector<1x16x16xf32>
    %151 = vector.shape_cast %150 : vector<1x16x16xf32> to vector<16x16xf32>
    %152 = vector.shape_cast %149 : vector<16x16xf32> to vector<1x16x16xf32>
    tpu.vector_store %arg15[%c3_101, %c0_102, %c0_103], %152 {strides = array<i32>} : memref<4x16x16xf32, #tpu.memory_space<vmem>>, vector<1x16x16xf32>,
    %c3_104 = arith.constant 3 : index
    %c0_105 = arith.constant 0 : index
    %c0_106 = arith.constant 0 : index
    %153 = vector.load %arg13[%c3_104, %c0_105, %c0_106] : memref<4x16x1xf32, #tpu.memory_space<vmem>>, vector<1x16x1xf32>
    %154 = vector.shape_cast %153 : vector<1x16x1xf32> to vector<16x1xf32>
    %155 = vector.shape_cast %129 : vector<16x1xf32> to vector<1x16x1xf32>
    tpu.vector_store %arg13[%c3_104, %c0_105, %c0_106], %155 {strides = array<i32>} : memref<4x16x1xf32, #tpu.memory_space<vmem>>, vector<1x16x1xf32>,
    %c2_i32 = arith.constant 2 : i32
    %156 = arith.cmpi eq, %arg2, %c2_i32 : i32
    %157 = arith.extui %156 : i1 to i32
    %c0_i32_107 = arith.constant 0 : i32
    %158 = arith.cmpi ne, %157, %c0_i32_107 : i32
    scf.if %158 {
      %c0_108 = arith.constant 0 : index
      %c0_109 = arith.constant 0 : index
      %c0_110 = arith.constant 0 : index
      %159 = vector.load %arg15[%c0_108, %c0_109, %c0_110] : memref<4x16x16xf32, #tpu.memory_space<vmem>>, vector<1x16x16xf32>
      %160 = vector.shape_cast %159 : vector<1x16x16xf32> to vector<16x16xf32>
      %c0_111 = arith.constant 0 : index
      %c0_112 = arith.constant 0 : index
      %c0_113 = arith.constant 0 : index
      %161 = vector.load %arg14[%c0_111, %c0_112, %c0_113] : memref<4x16x1xf32, #tpu.memory_space<vmem>>, vector<1x16x1xf32>
      %162 = vector.shape_cast %161 : vector<1x16x1xf32> to vector<16x1xf32>
      %163 = tpu.reciprocal %162 {approx = true} : vector<16x1xf32> -> vector<16x1xf32>
      %164 = vector.broadcast %163 : vector<16x1xf32> to vector<16x16xf32>
      %165 = arith.mulf %160, %164 : vector<16x16xf32>
      %c0_114 = arith.constant 0 : index
      %c0_115 = arith.constant 0 : index
      %166 = vector.load %arg16[%c0_114, %c0_115] : memref<16x64xf32, #tpu.memory_space<vmem>>, vector<16x16xf32>
      tpu.vector_store %arg16[%c0_114, %c0_115], %165 {strides = array<i32>} : memref<16x64xf32, #tpu.memory_space<vmem>>, vector<16x16xf32>,
      %c1_116 = arith.constant 1 : index
      %c0_117 = arith.constant 0 : index
      %c0_118 = arith.constant 0 : index
      %167 = vector.load %arg15[%c1_116, %c0_117, %c0_118] : memref<4x16x16xf32, #tpu.memory_space<vmem>>, vector<1x16x16xf32>
      %168 = vector.shape_cast %167 : vector<1x16x16xf32> to vector<16x16xf32>
      %c1_119 = arith.constant 1 : index
      %c0_120 = arith.constant 0 : index
      %c0_121 = arith.constant 0 : index
      %169 = vector.load %arg14[%c1_119, %c0_120, %c0_121] : memref<4x16x1xf32, #tpu.memory_space<vmem>>, vector<1x16x1xf32>
      %170 = vector.shape_cast %169 : vector<1x16x1xf32> to vector<16x1xf32>
      %171 = tpu.reciprocal %170 {approx = true} : vector<16x1xf32> -> vector<16x1xf32>
      %172 = vector.broadcast %171 : vector<16x1xf32> to vector<16x16xf32>
      %173 = arith.mulf %168, %172 : vector<16x16xf32>
      %c0_122 = arith.constant 0 : index
      %c16 = arith.constant 16 : index
      %174 = vector.load %arg16[%c0_122, %c16] : memref<16x64xf32, #tpu.memory_space<vmem>>, vector<16x16xf32>
      tpu.vector_store %arg16[%c0_122, %c16], %173 {strides = array<i32>} : memref<16x64xf32, #tpu.memory_space<vmem>>, vector<16x16xf32>,
      %c2_123 = arith.constant 2 : index
      %c0_124 = arith.constant 0 : index
      %c0_125 = arith.constant 0 : index
      %175 = vector.load %arg15[%c2_123, %c0_124, %c0_125] : memref<4x16x16xf32, #tpu.memory_space<vmem>>, vector<1x16x16xf32>
      %176 = vector.shape_cast %175 : vector<1x16x16xf32> to vector<16x16xf32>
      %c2_126 = arith.constant 2 : index
      %c0_127 = arith.constant 0 : index
      %c0_128 = arith.constant 0 : index
      %177 = vector.load %arg14[%c2_126, %c0_127, %c0_128] : memref<4x16x1xf32, #tpu.memory_space<vmem>>, vector<1x16x1xf32>
      %178 = vector.shape_cast %177 : vector<1x16x1xf32> to vector<16x1xf32>
      %179 = tpu.reciprocal %178 {approx = true} : vector<16x1xf32> -> vector<16x1xf32>
      %180 = vector.broadcast %179 : vector<16x1xf32> to vector<16x16xf32>
      %181 = arith.mulf %176, %180 : vector<16x16xf32>
      %c0_129 = arith.constant 0 : index
      %c32 = arith.constant 32 : index
      %182 = vector.load %arg16[%c0_129, %c32] : memref<16x64xf32, #tpu.memory_space<vmem>>, vector<16x16xf32>
      tpu.vector_store %arg16[%c0_129, %c32], %181 {strides = array<i32>} : memref<16x64xf32, #tpu.memory_space<vmem>>, vector<16x16xf32>,
      %c3_130 = arith.constant 3 : index
      %c0_131 = arith.constant 0 : index
      %c0_132 = arith.constant 0 : index
      %183 = vector.load %arg15[%c3_130, %c0_131, %c0_132] : memref<4x16x16xf32, #tpu.memory_space<vmem>>, vector<1x16x16xf32>
      %184 = vector.shape_cast %183 : vector<1x16x16xf32> to vector<16x16xf32>
      %c3_133 = arith.constant 3 : index
      %c0_134 = arith.constant 0 : index
      %c0_135 = arith.constant 0 : index
      %185 = vector.load %arg14[%c3_133, %c0_134, %c0_135] : memref<4x16x1xf32, #tpu.memory_space<vmem>>, vector<1x16x1xf32>
      %186 = vector.shape_cast %185 : vector<1x16x1xf32> to vector<16x1xf32>
      %187 = tpu.reciprocal %186 {approx = true} : vector<16x1xf32> -> vector<16x1xf32>
      %188 = vector.broadcast %187 : vector<16x1xf32> to vector<16x16xf32>
      %189 = arith.mulf %184, %188 : vector<16x16xf32>
      %c0_136 = arith.constant 0 : index
      %c48 = arith.constant 48 : index
      %190 = vector.load %arg16[%c0_136, %c48] : memref<16x64xf32, #tpu.memory_space<vmem>>, vector<16x16xf32>
      tpu.vector_store %arg16[%c0_136, %c48], %189 {strides = array<i32>} : memref<16x64xf32, #tpu.memory_space<vmem>>, vector<16x16xf32>,
      %c0_137 = arith.constant 0 : index
      %c0_138 = arith.constant 0 : index
      %191 = vector.load %arg16[%c0_137, %c0_138] : memref<16x64xf32, #tpu.memory_space<vmem>>, vector<16x64xf32>
      %c0_139 = arith.constant 0 : index
      %c0_140 = arith.constant 0 : index
      %192 = vector.load %arg9[%c0_139, %c0_140] : memref<64x32xf32, #tpu.memory_space<vmem>>, vector<64x32xf32>
      %cst_141 = arith.constant dense<0.000000e+00> : vector<16x32xf32>
      %193 = tpu.matmul %191, %192, %cst_141 {dimension_numbers = #tpu.dot_dimension_numbers<[1], [0], [0], [1], [0, 0, 1, 1], [], []>} : vector<16x64xf32>, vector<64x32xf32>, vector<16x32xf32> -> vector<16x32xf32>
      %c0_142 = arith.constant 0 : index
      %c0_143 = arith.constant 0 : index
      %194 = vector.load %arg10[%c0_142, %c0_143] : memref<1x32xf32, #tpu.memory_space<vmem>>, vector<1x32xf32>
      %195 = vector.broadcast %194 : vector<1x32xf32> to vector<16x32xf32>
      %196 = arith.addf %193, %195 : vector<16x32xf32>
      %c0_144 = arith.constant 0 : index
      %c0_145 = arith.constant 0 : index
      %c0_146 = arith.constant 0 : index
      %197 = vector.load %arg11[%c0_144, %c0_145, %c0_146] : memref<1x16x32xf32, #tpu.memory_space<vmem>>, vector<1x16x32xf32>
      %198 = vector.shape_cast %197 : vector<1x16x32xf32> to vector<16x32xf32>
      %199 = vector.shape_cast %196 : vector<16x32xf32> to vector<1x16x32xf32>
      tpu.vector_store %arg11[%c0_144, %c0_145, %c0_146], %199 {strides = array<i32>} : memref<1x16x32xf32, #tpu.memory_space<vmem>>, vector<1x16x32xf32>,
    } else {
    }
    return
  }
  func.func @transform_0(%arg0: i32, %arg1: i32, %arg2: i32) -> (i32, i32, i32) {
    %c0_i32 = arith.constant 0 : i32
    %c0_i32_0 = arith.constant 0 : i32
    return %arg0, %arg1, %c0_i32 : i32, i32, i32
  }
  func.func @transform_1(%arg0: i32, %arg1: i32, %arg2: i32) -> (i32, i32, i32) {
    %c0_i32 = arith.constant 0 : i32
    %c0_i32_0 = arith.constant 0 : i32
    return %arg0, %arg2, %c0_i32 : i32, i32, i32
  }
  func.func @transform_2(%arg0: i32, %arg1: i32, %arg2: i32) -> (i32, i32) {
    %c0_i32 = arith.constant 0 : i32
    %c0_i32_0 = arith.constant 0 : i32
    %c0_i32_1 = arith.constant 0 : i32
    return %c0_i32, %c0_i32_0 : i32, i32
  }
  func.func @transform_3(%arg0: i32, %arg1: i32, %arg2: i32) -> (i32, i32) {
    %c0_i32 = arith.constant 0 : i32
    %c0_i32_0 = arith.constant 0 : i32
    %c0_i32_1 = arith.constant 0 : i32
    return %c0_i32, %c0_i32_0 : i32, i32
  }
  func.func @transform_4(%arg0: i32, %arg1: i32, %arg2: i32) -> (i32, i32) {
    %c0_i32 = arith.constant 0 : i32
    %c0_i32_0 = arith.constant 0 : i32
    %c0_i32_1 = arith.constant 0 : i32
    return %c0_i32, %c0_i32_0 : i32, i32
  }
  func.func @transform_5(%arg0: i32, %arg1: i32, %arg2: i32) -> (i32, i32) {
    %c0_i32 = arith.constant 0 : i32
    %c0_i32_0 = arith.constant 0 : i32
    %c0_i32_1 = arith.constant 0 : i32
    return %c0_i32, %c0_i32_0 : i32, i32
  }
  func.func @transform_6(%arg0: i32, %arg1: i32, %arg2: i32) -> (i32, i32) {
    %c0_i32 = arith.constant 0 : i32
    %c0_i32_0 = arith.constant 0 : i32
    %c0_i32_1 = arith.constant 0 : i32
    return %c0_i32, %c0_i32_0 : i32, i32
  }
  func.func @transform_7(%arg0: i32, %arg1: i32, %arg2: i32) -> (i32, i32) {
    %c0_i32 = arith.constant 0 : i32
    %c0_i32_0 = arith.constant 0 : i32
    %c0_i32_1 = arith.constant 0 : i32
    return %c0_i32, %c0_i32_0 : i32, i32
  }
  func.func @transform_8(%arg0: i32, %arg1: i32, %arg2: i32) -> (i32, i32, i32) {
    %c0_i32 = arith.constant 0 : i32
    %c0_i32_0 = arith.constant 0 : i32
    return %arg0, %arg1, %c0_i32 : i32, i32, i32
  }
}

</mosaic_0001>

<bundles_post_ra>
// kernel: tpu_custom_call.1
= control target key start
LH: loop header
LB: loop body
LE: loop exit
PB: predicated region body
PF: predicated region fallthrough
CT: control target
= control target key end

     0   :  { %s3855_s0 = inlined_call_operand.hbm [shape: f32[2,32,32], index: 0, kind: input, shape index: {}]   ;;  %s3856_s1 = inlined_call_operand.hbm [shape: f32[2,24,48], index: 1, kind: input, shape index: {}]   ;;  %s3857_s2 = inlined_call_operand.hbm [shape: f32[48,32], index: 2, kind: input, shape index: {}]   ;;  %s3858_s3 = inlined_call_operand.hbm [shape: f32[1,32], index: 3, kind: input, shape index: {}]   ;;  %s3859_s4 = inlined_call_operand.hbm [shape: f32[32,64], index: 4, kind: input, shape index: {}]   ;;  %s3860_s5 = inlined_call_operand.hbm [shape: f32[32,128], index: 5, kind: input, shape index: {}]   ;;  %s3861_s6 = inlined_call_operand.hbm [shape: f32[64,32], index: 6, kind: input, shape index: {}]   ;;  %s3862_s7 = inlined_call_operand.hbm [shape: f32[1,32], index: 7, kind: input, shape index: {}]   ;;  %s3863_s8 = inlined_call_operand.hbm [shape: f32[2,32,32], index: 8, kind: output, shape index: {}]  }
   0x1   :  { %3880 = sst [smem:[#allocation40_spill]] %s3855_s0 }
   0x2   :  { %3881 = sst [smem:[#allocation41_spill]] %s3856_s1 }
   0x3   :  { %3882 = sst [smem:[#allocation42_spill]] %s3857_s2 }
   0x4   :  { %3883 = sst [smem:[#allocation43_spill]] %s3858_s3 }
   0x5   :  { %3884 = sst [smem:[#allocation44_spill]] %s3859_s4 }
   0x6   :  { %3885 = sst [smem:[#allocation45_spill]] %s3860_s5 }
   0x7   :  { %3886 = sst [smem:[#allocation46_spill]] %s3861_s6 }
   0x8   :  { %3887 = sst [smem:[#allocation47_spill]] %s3862_s7 }
   0x9   :  { %3888 = sst [smem:[#allocation48_spill]] %s3863_s8 }
   0xa   :  { %13 = vsyncpa [#allocation8], 0 }
   0xb   :  { %15 = vsyncpa [#allocation8 + $0x1], 0 }
   0xc   :  { %16 = vsyncpa [#allocation11], 0 }
   0xd   :  { %18 = vsyncpa [#allocation11 + $0x1], 0 }
   0xe   :  { %19 = vsyncpa [#allocation14], 0 }
   0xf   :  { %20 = vsyncpa [#allocation17], 0 }
  0x10   :  { %21 = vsyncpa [#allocation20], 0 }
  0x11   :  { %22 = vsyncpa [#allocation9], 0 }
  0x12   :  { %24 = vsyncpa [#allocation9 + $0x1], 0  ;;  %s3134_s27 = smov 0   ;;  %s3136_s28 = smov 0  }
  0x13   :  { %s3138_s29 = smov 0   ;;  %s3140_s30 = smov 0  }
  0x14   :  { %s3142_s9 = smov 0   ;;  %s3144_s10 = smov 0  }
  0x15   :  { %s3146_s11 = smov 0   ;;  %s3148_s12 = smov 0  }
  0x16   :  { %s3150_s13 = smov 0   ;;  %s3152_s14 = smov 0  }
  0x17   :  { %s3154_s15 = smov 0   ;;  %s3156_s16 = smov 0  }
  0x18   :  { %s3158_s17 = smov 0  }
  0x19 LB: > { %3889 = sst [smem:[#allocation29_spill]] %s3006_s27  ;;  %s3200_s18 = sadd.s32 4294967295, %s3054_s17   ;;  %s3054_s17 = sphi %s3158_s17, %s30_s17   ;;  %s3050_s16 = sphi %s3156_s16, %s3963_s16   ;;  %s3046_s15 = sphi %s3154_s15, %s3955_s15   ;;  %s3042_s14 = sphi %s3152_s14, %s3962_s14   ;;  %s3038_s13 = sphi %s3150_s13, %s3961_s13   ;;  %s3034_s12 = sphi %s3148_s12, %s3953_s12   ;;  %s3030_s11 = sphi %s3146_s11, %s3960_s11   ;;  %s3026_s10 = sphi %s3144_s10, %s3959_s10   ;;  %s3022_s9 = sphi %s3142_s9, %s3958_s9   ;;  %s3018_s30 = sphi %s3140_s30, %s3957_s30   ;;  %s3014_s29 = sphi %s3138_s29, %s3956_s29   ;;  %s3010_s28 = sphi %s3136_s28, %s3952_s28   ;;  %s3006_s27 = sphi %s3134_s27, %s3951_s27  }
  0x1a   : > { %3890 = sst [smem:[#allocation30_spill]] %s3010_s28  ;;  %p2160_p0 = scmp.ge.s32.totalorder %s3054_s17, 1 }
  0x1b   : > { %3891 = sst [smem:[#allocation31_spill]] %s3014_s29  ;;  %p3869_p1 = scmp.eq.s32.totalorder %s3200_s18, 0 }
  0x1c   : > { %3892 = sst [smem:[#allocation32_spill]] %s3030_s11  ;;  %p264_p2 = scmp.lt.s32.totalorder %s3054_s17, 13 }
  0x1d   : > { %3893 = sst [smem:[#allocation33_spill]] %s3034_s12  ;;  %s3056_s20 = smov [#allocation12]  }
  0x1e   : > { %3894 = sst [smem:[#allocation34_spill]] %s3038_s13  ;;  %p3205_p3 = pnand %p2160_p0, %p264_p2 }
  0x1f   : > { %3895 = sst [smem:[#allocation35_spill]] %s3046_s15  ;;  %s276_s21 = sshll.u32 %s3056_s20, 4  ;;  %s3209_s21 = int_to_ptr.vmem [resolvable:$true] %s276_s21 }
  0x20   : > { %s3896_s19 = scalar_select %p3205_p3, 1, 0 }
  0x21   : > { %p2438_p4 = pneg %p3205_p3  ;;  %s3057_s23 = smov [#allocation13]  }
  0x22   : > { %3897 = sst [smem:[#allocation36_spill]] %s3896_s19  ;;  %s290_s24 = sshll.u32 %s3057_s23, 4  ;;  %s3219_s24 = int_to_ptr.vmem [resolvable:$true] %s290_s24 }
  0x23   : > { %p3215_p5 = pnand %p2438_p4, %p3869_p1  ;;  %s3058_s25 = smov [#allocation16]  }
  0x24   : > { %s3221_s26 = sshll.u32 %s3058_s25, 4  ;;  %s3899_s2 = sld [smem:[#allocation42_spill]]  ;;  %s314_s26 = int_to_ptr.vmem [resolvable:$true] %s3221_s26 }
  0x25   : > { %p3231_p7 = pneg %p3215_p5 }
  0x2a   : > { %s2668_s20 = scalar_lea.hbm %s3899_s2, 768 }
  0x2b   : > { %p2669_p6 = scmp.ne.s32.totalorder %s3899_s2, %s2668_s20  ;;  %p2675_p10 = scmp.lt.u32.totalorder %s2668_s20, %s3899_s2 }
  0x2d   : > { %p2671_p8 = pnand %p3231_p7, %p2669_p6 }
  0x2f   : > { %p2672_p9 = pneg %p2671_p8 }
  0x31   : > { %p2677_p11 = pnand %p2675_p10, %p2672_p9 }
  0x33   : > { %2680 = shalt.err (!%p2677_p11)
}
  0x34   : > { %s2681_s8 = scalar_lea.vmem %s3209_s21, 768  ;;  %p2689_p2 = scmp.lt.s32.totalorder %s3209_s21, %s3209_s21 }
  0x35   : > { %p2682_p12 = scmp.ne.s32.totalorder %s3209_s21, %s2681_s8  ;;  %p2690_p4 = scmp.lt.s32.totalorder %s2681_s8, %s2681_s8 }
  0x37   : > { %p2684_p13 = pnand %p2682_p12, %p3231_p7  ;;  %p2691_p6 = por %p2690_p4, %p2689_p2 }
  0x39   : > { %p2685_p0 = pneg %p2684_p13 }
  0x3b   : > { %p2692_p8 = pnand %p2691_p6, %p2685_p0 }
  0x3d   : > { %2695 = shalt.err (!%p2692_p8)
}
  0x3e   : > { %s3871_s11 = smov 128   ;;  %s3060_s12 = smov 8  }
  0x3f   : > { %2441 = dma.hbm_to_vmem [thread:$0]  (!%p3215_p5), %s3899_s2, 768, %s3209_s21, [#allocation11], %s3871_s11, %s3871_s11, %s3060_s12  }
  0x40   : > { %s3901_s3 = sld [smem:[#allocation43_spill]] }
  0x46   : > { %s2696_s8 = scalar_lea.hbm %s3901_s3, 16 }
  0x47   : > { %p2697_p9 = scmp.ne.s32.totalorder %s3901_s3, %s2696_s8  ;;  %p2703_p12 = scmp.lt.u32.totalorder %s2696_s8, %s3901_s3 }
  0x49   : > { %p2699_p10 = pnand %p2697_p9, %p3231_p7 }
  0x4b   : > { %p2700_p11 = pneg %p2699_p10 }
  0x4d   : > { %p2705_p13 = pnand %p2703_p12, %p2700_p11 }
  0x4f   : > { %2708 = shalt.err (!%p2705_p13)
}
  0x50   : > { %s2709_s21 = scalar_lea.vmem %s3219_s24, 16  ;;  %s2716_s1 = scalar_lea.vmem %s3219_s24, 32 }
  0x51   : > { %p2710_p0 = scmp.ne.s32.totalorder %s3219_s24, %s2709_s21  ;;  %p2717_p6 = scmp.lt.s32.totalorder %s3219_s24, %s3219_s24 }
  0x52   : > { %p2718_p8 = scmp.lt.s32.totalorder %s2716_s1, %s2709_s21 }
  0x53   : > { %p2712_p2 = pnand %p2710_p0, %p3231_p7 }
  0x54   : > { %p2719_p9 = por %p2718_p8, %p2717_p6 }
  0x55   : > { %p2713_p4 = pneg %p2712_p2 }
  0x57   : > { %p2720_p10 = pnand %p2719_p9, %p2713_p4 }
  0x59   : > { %2723 = shalt.err (!%p2720_p10)
}
  0x5a   : > { %2444 = dma.hbm_to_vmem [thread:$0]  (!%p3215_p5), %s3901_s3, 16, %s3219_s24, [#allocation14]  }
  0x5b   : > { %s3902_s5 = sld [smem:[#allocation45_spill]] }
  0x61   : > { %s2724_s20 = scalar_lea.hbm %s3902_s5, 512 }
  0x62   : > { %p2725_p11 = scmp.ne.s32.totalorder %s3902_s5, %s2724_s20  ;;  %p2731_p0 = scmp.lt.u32.totalorder %s2724_s20, %s3902_s5 }
  0x64   : > { %p2727_p12 = pnand %p2725_p11, %p3231_p7 }
  0x66   : > { %p2728_p13 = pneg %p2727_p12 }
  0x68   : > { %p2733_p2 = pnand %p2731_p0, %p2728_p13 }
  0x6a   : > { %2736 = shalt.err (!%p2733_p2)
}
  0x6b   : > { %s2737_s1 = scalar_lea.vmem %s314_s26, 512  ;;  %p2745_p9 = scmp.lt.s32.totalorder %s314_s26, %s314_s26 }
  0x6c   : > { %p2738_p4 = scmp.ne.s32.totalorder %s314_s26, %s2737_s1  ;;  %p2746_p10 = scmp.lt.s32.totalorder %s2737_s1, %s2737_s1 }
  0x6e   : > { %p2740_p6 = pnand %p2738_p4, %p3231_p7  ;;  %p2747_p1 = por %p2746_p10, %p2745_p9 }
  0x70   : > { %p2741_p8 = pneg %p2740_p6 }
  0x72   : > { %p2748_p3 = pnand %p2747_p1, %p2741_p8 }
  0x74   : > { %2751 = shalt.err (!%p2748_p3)
}
  0x75   : > { %2450 = dma.hbm_to_vmem [thread:$0]  (!%p3215_p5), %s3902_s5, 512, %s314_s26, [#allocation17], %s3871_s11, %s3871_s11, %s3060_s12  }
  0x76   : > { %s3061_s28 = smov [#allocation15]   ;;  %s3062_s13 = smov [#allocation18]  }
  0x77   : > { %s300_s29 = sshll.u32 %s3061_s28, 4  ;;  %s326_s20 = sshll.u32 %s3062_s13, 4  ;;  %s301_s29 = int_to_ptr.vmem [resolvable:$true] %s300_s29  ;;  %s327_s20 = int_to_ptr.vmem [resolvable:$true] %s326_s20 }
  0x78   : > { %s3903_s4 = sld [smem:[#allocation44_spill]] }
  0x7e   : > { %s2752_s8 = scalar_lea.hbm %s3903_s4, 512 }
  0x7f   : > { %p2753_p1 = scmp.ne.s32.totalorder %s3903_s4, %s2752_s8  ;;  %p2759_p12 = scmp.lt.u32.totalorder %s2752_s8, %s3903_s4 }
  0x81   : > { %p2755_p3 = pnand %p2753_p1, %p3231_p7 }
  0x83   : > { %p2756_p11 = pneg %p2755_p3 }
  0x85   : > { %p2761_p13 = pnand %p2759_p12, %p2756_p11 }
  0x87   : > { %2764 = shalt.err (!%p2761_p13)
}
  0x88   : > { %s2765_s26 = scalar_lea.vmem %s301_s29, 512  ;;  %p2773_p6 = scmp.lt.s32.totalorder %s301_s29, %s301_s29 }
  0x89   : > { %p2766_p0 = scmp.ne.s32.totalorder %s301_s29, %s2765_s26  ;;  %p2774_p8 = scmp.lt.s32.totalorder %s2765_s26, %s2765_s26 }
  0x8b   : > { %p2768_p2 = pnand %p2766_p0, %p3231_p7  ;;  %p2775_p9 = por %p2774_p8, %p2773_p6 }
  0x8d   : > { %p2769_p4 = pneg %p2768_p2 }
  0x8f   : > { %p2776_p10 = pnand %p2775_p9, %p2769_p4 }
  0x91   : > { %2779 = shalt.err (!%p2776_p10)
}
  0x92   : > { %2447 = dma.hbm_to_vmem [thread:$0]  (!%p3215_p5), %s3903_s4, 512, %s301_s29, [#allocation14], %s3871_s11, %s3871_s11, %s3060_s12  }
  0x93   : > { %s3904_s6 = sld [smem:[#allocation46_spill]] }
  0x99   : > { %s2780_s23 = scalar_lea.hbm %s3904_s6, 1024 }
  0x9a   : > { %p2781_p1 = scmp.ne.s32.totalorder %s3904_s6, %s2780_s23  ;;  %p2787_p12 = scmp.lt.u32.totalorder %s2780_s23, %s3904_s6 }
  0x9c   : > { %p2783_p3 = pnand %p2781_p1, %p3231_p7 }
  0x9e   : > { %p2784_p11 = pneg %p2783_p3 }
  0xa0   : > { %p2789_p13 = pnand %p2787_p12, %p2784_p11 }
  0xa2   : > { %2792 = shalt.err (!%p2789_p13)
}
  0xa3   : > { %s2793_s24 = scalar_lea.vmem %s327_s20, 1024  ;;  %p2801_p6 = scmp.lt.s32.totalorder %s327_s20, %s327_s20 }
  0xa4   : > { %p2794_p0 = scmp.ne.s32.totalorder %s327_s20, %s2793_s24  ;;  %p2802_p8 = scmp.lt.s32.totalorder %s2793_s24, %s2793_s24 }
  0xa6   : > { %p2796_p2 = pnand %p2794_p0, %p3231_p7  ;;  %p2803_p9 = por %p2802_p8, %p2801_p6 }
  0xa8   : > { %p2797_p4 = pneg %p2796_p2 }
  0xaa   : > { %p2804_p10 = pnand %p2803_p9, %p2797_p4 }
  0xac   : > { %2807 = shalt.err (!%p2804_p10)
}
  0xad   : > { %2453 = dma.hbm_to_vmem [thread:$0]  (!%p3215_p5), %s3904_s6, 1024, %s327_s20, [#allocation17], %s3871_s11, %s3871_s11, %s3060_s12  }
  0xae   : > { %s3063_s2 = smov [#allocation19]   ;;  %s3905_s7 = sld [smem:[#allocation47_spill]] }
  0xaf   : > { %s340_s27 = sshll.u32 %s3063_s2, 4  ;;  %s341_s27 = int_to_ptr.vmem [resolvable:$true] %s340_s27 }
  0xb4   : > { %s2808_s23 = scalar_lea.hbm %s3905_s7, 16 }
  0xb5   : > { %p2809_p1 = scmp.ne.s32.totalorder %s3905_s7, %s2808_s23  ;;  %p2815_p12 = scmp.lt.u32.totalorder %s2808_s23, %s3905_s7 }
  0xb7   : > { %p2811_p3 = pnand %p2809_p1, %p3231_p7 }
  0xb9   : > { %p2812_p11 = pneg %p2811_p3 }
  0xbb   : > { %p2817_p13 = pnand %p2815_p12, %p2812_p11 }
  0xbd   : > { %2820 = shalt.err (!%p2817_p13)
}
  0xbe   : > { %s2821_s20 = scalar_lea.vmem %s341_s27, 16  ;;  %s2828_s24 = scalar_lea.vmem %s341_s27, 32 }
  0xbf   : > { %p2822_p0 = scmp.ne.s32.totalorder %s341_s27, %s2821_s20  ;;  %p2829_p6 = scmp.lt.s32.totalorder %s341_s27, %s341_s27 }
  0xc0   : > { %p2830_p8 = scmp.lt.s32.totalorder %s2828_s24, %s2821_s20 }
  0xc1   : > { %p2824_p2 = pnand %p2822_p0, %p3231_p7 }
  0xc2   : > { %p2831_p9 = por %p2830_p8, %p2829_p6 }
  0xc3   : > { %p2825_p4 = pneg %p2824_p2 }
  0xc5   : > { %p2832_p10 = pnand %p2831_p9, %p2825_p4 }
  0xc7   : > { %2835 = shalt.err (!%p2832_p10)
}
  0xc8   : > { %2456 = dma.hbm_to_vmem [thread:$0]  (!%p3215_p5), %s3905_s7, 16, %s341_s27, [#allocation20]  }
  0xc9   : > { %s2159_s19 = sadd.s32 4294967294, %s3054_s17   ;;  %p65_p7 = scmp.ne.s32.totalorder %s3026_s10, %s3022_s9 }
  0xca   : > { %p3873_p1 = scmp.eq.s32.totalorder %s3054_s17, 0  ;;  %p71_p3 = scmp.ne.s32.totalorder %s3022_s9, %s3018_s30 }
  0xcb   : > { %p251_p11 = scmp.eq.s32.totalorder %s3200_s18, 11  ;;  %p257_p12 = scmp.eq.s32.totalorder %s2159_s19, 11 }
  0xcc   : > { %p3371_p13 = por %p3873_p1, %p65_p7  ;;  %p3907_p0 = scmp.eq.s32.totalorder %s3200_s18, 0 }
  0xcd   : > { %p3381_p5 = por %p251_p11, %p65_p7  ;;  %p3385_p4 = por %p257_p12, %p71_p3 }
  0xce   : > { %p3377_p2 = por %p3907_p0, %p71_p3  ;;  %p3872_p6 = scmp.lt.s32.totalorder %s3054_s17, 12 }
  0xcf   : > { %s3909_s27 = scalar_select %p3381_p5, 1, 0 }
  0xd0   : > { %s3910_s13 = scalar_select %p3385_p4, 1, 0 }
  0xd1   : > { %s351_s23 = sand.u32 1, %s3026_s10   ;;  %s2169_s8 = sshll.u32 %s3046_s15, 1 }
  0xd2   : > { %3911 = sst [smem:[#allocation37_spill]] %s3910_s13  ;;  %s2168_s25 = sshll.u32 %s351_s23, 4 }
  0xd3   : > { %s2170_s21 = sshll.u32 %s3050_s16, 2  ;;  %s355_s1 = scalar_lea.vmem [#allocation7], %s2168_s25 }
  0xd4   : > { %s364_s20 = sshll.u32 %s355_s1, 4  ;;  %s361_s24 = sadd.s32 %s2170_s21, %s2169_s8  ;;  %s3393_s20 = int_to_ptr.vmem [resolvable:$true] %s364_s20 }
  0xd5   : > { %s2171_s29 = sshll.u32 %s361_s24, 7  ;;  %p3399_p8 = pnand %p3872_p6, %p3371_p13 }
  0xd6   : > { %s3913_s0 = sld [smem:[#allocation40_spill]]  ;;  %s3408_s25 = scalar_lea.sflag [#allocation8], %s351_s23 }
  0xd7   : > { %p2838_p10 = pneg %p3399_p8 }
  0xdc   : > { %s3406_s11 = scalar_lea.hbm %s3913_s0, %s2171_s29  ;;  %s2841_s21 = scalar_lea.hbm %s3913_s0, 1024 }
  0xdd   : > { %s2836_s8 = scalar_lea.hbm %s3406_s11, 256  ;;  %p2842_p11 = scmp.lt.u32.totalorder %s3406_s11, %s3913_s0 }
  0xde   : > { %p2837_p9 = scmp.ne.s32.totalorder %s3406_s11, %s2836_s8  ;;  %p2843_p12 = scmp.lt.u32.totalorder %s2841_s21, %s2836_s8 }
  0xdf   : > { %p2845_p0 = scmp.lt.u32.totalorder %s2836_s8, %s3406_s11 }
  0xe0   : > { %p2839_p7 = pnand %p2838_p10, %p2837_p9  ;;  %p2844_p13 = por %p2843_p12, %p2842_p11 }
  0xe2   : > { %p2840_p3 = pneg %p2839_p7  ;;  %p2846_p6 = por %p2845_p0, %p2844_p13 }
  0xe4   : > { %p2847_p1 = pnand %p2846_p6, %p2840_p3 }
  0xe6   : > { %2850 = shalt.err (!%p2847_p1)
}
  0xe7   : > { %s2851_s23 = scalar_lea.vmem %s3393_s20, 256  ;;  %s3064_s29 = smov [#allocation7]  }
  0xe8   : > { %p2852_p9 = scmp.ne.s32.totalorder %s3393_s20, %s2851_s23  ;;  %s2856_s19 = sshll.u32 %s3064_s29, 4  ;;  %s2857_s19 = int_to_ptr.vmem [resolvable:$false] %s2856_s19 }
  0xe9   : > { %s2858_s2 = scalar_lea.vmem %s2857_s19, 512  ;;  %p2859_p5 = scmp.lt.s32.totalorder %s3393_s20, %s2857_s19 }
  0xea   : > { %p2854_p7 = pnand %p2852_p9, %p2838_p10  ;;  %p2860_p11 = scmp.lt.s32.totalorder %s2858_s2, %s2851_s23 }
  0xec   : > { %p2855_p4 = pneg %p2854_p7  ;;  %p2861_p12 = por %p2860_p11, %p2859_p5 }
  0xee   : > { %p2862_p13 = pnand %p2861_p12, %p2855_p4 }
  0xf0   : > { %2865 = shalt.err (!%p2862_p13)
}
  0xf1   : > { %s3914_s8 = smov 128   ;;  %s3915_s22 = sld [smem:[#allocation31_spill]] }
  0xf2   : > { %s3916_s21 = sld [smem:[#allocation29_spill]]  ;;  %s3917_s1 = sld [smem:[#allocation30_spill]] }
  0xf3   : > { %2460 = dma.hbm_to_vmem [thread:$0]  (!%p3399_p8), %s3406_s11, 256, %s3393_s20, %s3408_s25, %s3914_s8, %s3914_s8, %s3060_s12  }
  0xf4   : > { %s42_s24 = sadd.s32 1, %s3042_s14  ;;  %s49_s23 = sadd.s32 1, %s3050_s16 }
  0xf5   : > { %p43_p1 = scmp.ge.s32.totalorder %s42_s24, 3  ;;  %s3919_s19 = sadd.s32 1, %s3046_s15 }
  0xf6   : > { %p3920_p8 = scmp.eq.s32.totalorder %s3200_s18, 0  ;;  %s374_s12 = sand.u32 1, %s3054_s17  }
  0xf7   : > { %s3965_s24 = smov (%p43_p1, %s42_s24), 0  ;;  %s3967_s19 = smov (!%p43_p1, %s3919_s19), %s3046_s15 }
  0xf8   : > { %p99_p5 = scmp.ne.s32.totalorder %s3917_s1, %s3916_s21  ;;  %3918 = sst [smem:[#allocation38_spill]] %s3965_s24 }
  0xf9   : > { %s82_s2 = ssub.s32 %s3042_s14, %s3965_s24  ;;  %p93_p4 = scmp.ne.s32.totalorder %s3915_s22, %s3917_s1 }
  0xfa   : > { %p47_p6 = scmp.ge.s32.totalorder %s3967_s19, 2  ;;  %p3456_p10 = por %p99_p5, %p3920_p8 }
  0xfb   : > { %s376_s20 = sand.u32 1, %s3915_s22   ;;  %p3923_p3 = scmp.eq.s32.totalorder %s3054_s17, 0 }
  0xfc   : > { %s3921_s11 = scalar_select %p3456_p10, 1, 0 }
  0xfd   : > { %s3969_s19 = smov (%p47_p6, %s3967_s19), 0  ;;  %s3971_s23 = smov (!%p47_p6, %s49_s23), %s3050_s16 }
  0xfe   : > { %3922 = sst [smem:[#allocation39_spill]] %s3969_s19  ;;  %s54_s25 = ssub.s32 %s3046_s15, %s3969_s19 }
  0xff   : > { %p3469_p0 = por %p93_p4, %p3923_p3  ;;  %p51_p9 = scmp.ge.s32.totalorder %s3971_s23, 2 }
 0x100   : > { %s2172_s21 = sshll.u32 %s376_s20, 3  ;;  %s2407_s1 = smul.u32 3, %s3050_s16 }
 0x101   : > { %s3973_s23 = smov (%p51_p9, %s3971_s23), 0  ;;  %s3925_s7 = sld [smem:[#allocation41_spill]] }
 0x102   : > { %s383_s29 = sadd.s32 %s3042_s14, %s2407_s1  ;;  %s53_s26 = ssub.s32 %s3050_s16, %s3973_s23 }
 0x103   : > { %s2173_s0 = sshll.u32 %s383_s29, 7  ;;  %s55_s3 = sor.u32 %s54_s25, %s53_s26 }
 0x104   : > { %s83_s4 = sor.u32 %s82_s2, %s53_s26  ;;  %p56_p7 = scmp.eq.s32.totalorder %s55_s3, 0 }
 0x105   : > { %p84_p11 = scmp.eq.s32.totalorder %s83_s4, 0  ;;  %s378_s20 = scalar_lea.vmem [#allocation10], %s2172_s21 }
 0x106   : > { %s387_s24 = sshll.u32 %s378_s20, 4  ;;  %s3926_s15 = sadd.s32 1, %s3026_s10  ;;  %s3494_s24 = int_to_ptr.vmem [resolvable:$true] %s387_s24 }
 0x107   : > { %s3482_s19 = scalar_lea.hbm %s3925_s7, %s2173_s0  ;;  %s3927_s1 = sadd.s32 1, %s3915_s22 }
 0x108   : > { %s3487_s13 = scalar_select %p56_p7, %s3026_s10, %s3926_s15  }
 0x109   : > { %s3975_s22 = smov (!%p84_p11, %s3915_s22), %s3927_s1  ;;  %p3928_p12 = scmp.lt.s32.totalorder %s3054_s17, 12 }
 0x10a   : > { %s375_s0 = scalar_lea.sflag [#allocation11], %s374_s12  ;;  %s2866_s4 = scalar_lea.hbm %s3482_s19, 128 }
 0x10b   : > { %p3500_p13 = pnand %p3928_p12, %p3469_p0  ;;  %p2867_p1 = scmp.ne.s32.totalorder %s3482_s19, %s2866_s4 }
 0x10c   : > { %s2871_s15 = scalar_lea.hbm %s3925_s7, 768  ;;  %p2872_p8 = scmp.lt.u32.totalorder %s3482_s19, %s3925_s7 }
 0x10d   : > { %p2868_p5 = pneg %p3500_p13  ;;  %p2873_p3 = scmp.lt.u32.totalorder %s2871_s15, %s2866_s4 }
 0x10e   : > { %p2875_p9 = scmp.lt.u32.totalorder %s2866_s4, %s3482_s19 }
 0x10f   : > { %p2869_p4 = pnand %p2868_p5, %p2867_p1  ;;  %p2874_p0 = por %p2873_p3, %p2872_p8 }
 0x111   : > { %p2870_p6 = pneg %p2869_p4  ;;  %p2876_p7 = por %p2875_p9, %p2874_p0 }
 0x113   : > { %p2877_p11 = pnand %p2876_p7, %p2870_p6 }
 0x115   : > { %2880 = shalt.err (!%p2877_p11)
}
 0x116   : > { %s2881_s2 = scalar_lea.vmem %s3494_s24, 128  ;;  %s3065_s12 = smov [#allocation10]  }
 0x117   : > { %p2882_p12 = scmp.ne.s32.totalorder %s3494_s24, %s2881_s2  ;;  %s2886_s25 = sshll.u32 %s3065_s12, 4  ;;  %s2887_s25 = int_to_ptr.vmem [resolvable:$false] %s2886_s25 }
 0x118   : > { %s2888_s8 = scalar_lea.vmem %s2887_s25, 256  ;;  %p2889_p10 = scmp.lt.s32.totalorder %s3494_s24, %s2887_s25 }
 0x119   : > { %p2884_p1 = pnand %p2882_p12, %p2868_p5  ;;  %p2890_p8 = scmp.lt.s32.totalorder %s2888_s8, %s2881_s2 }
 0x11b   : > { %p2885_p4 = pneg %p2884_p1  ;;  %p2891_p3 = por %p2890_p8, %p2889_p10 }
 0x11d   : > { %p2892_p0 = pnand %p2891_p3, %p2885_p4 }
 0x11f   : > { %2895 = shalt.err (!%p2892_p0)
}
 0x120   : > { %2463 = dma.hbm_to_vmem [thread:$0]  (!%p3500_p13), %s3482_s19, 128, %s3494_s24, %s375_s0  }
 0x121   : > { %s3930_s21 = sld [smem:[#allocation36_spill]] }
 0x127   : > { %p3931_p6 = scmp.ne.s32.totalorder %s3930_s21, 0 }
 0x128   : > { %s3532_s20 = sand.u32 (!%p3931_p6), 1, %s3022_s9  }
 0x129   : > { %396 = sbr.rel (%p3931_p6) target bundleno = 2429 (0x97d), region = 52  ;;  %s2175_s1 = sshll.u32 (!%p3931_p6), %s3532_s20, 4 }
 0x12a   : > { %s399_s4 = scalar_lea.sflag (!%p3931_p6), [#allocation8], %s3532_s20  ;;  %s3536_s5 = scalar_lea.vmem (!%p3931_p6), [#allocation7], %s2175_s1 }
 0x130   : > { %2977 = dma.done.wait (%p3377_p2), %s399_s4, 256  }
 0x131   : > { %2979 = vsyncadd (%p3377_p2), %s399_s4, 4294967040  ;;  %s3932_s24 = sld [smem:[#allocation30_spill]]  ;;  %s407_s19 = sand.u32 1, %s3200_s18  }
 0x132   : > { %s408_s6 = scalar_lea.sflag [#allocation11], %s407_s19  ;;  %p3933_p10 = scmp.ne.s32.totalorder %s3921_s11, 0 }
 0x137   : > { %s409_s3 = sand.u32 1, %s3932_s24  }
 0x138   : > { %s3544_s0 = sshll.u32 %s409_s3, 3 }
 0x139   : > { %s411_s15 = scalar_lea.vmem [#allocation10], %s3544_s0 }
 0x13a   : > { %2981 = dma.done.wait (%p3933_p10), %s408_s6, 128  }
 0x13b   : > { %2983 = vsyncadd (%p3933_p10), %s408_s6, 4294967168  ;;  %p3934_p13 = scmp.eq.s32.totalorder %s3200_s18, 0 }
 0x13d   : > { %2985 = dma.done.wait (%p3934_p13), [#allocation11], 768   ;;  %p3935_p2 = pmov %p3934_p13 }
 0x13f   : > { %2987 = vsyncadd (%p3935_p2), [#allocation11], 4294966528  ;;  %p3936_p5 = pmov %p3935_p2 }
 0x140   : > { %p3937_p9 = pmov %p3935_p2 }
 0x141   : > { %2989 = dma.done.wait (%p3936_p5), [#allocation14], 528  }
 0x142   : > { %2991 = vsyncadd (%p3937_p9), [#allocation14], 4294966768  ;;  %p3938_p7 = pmov %p3935_p2 }
 0x143   : > { %p3939_p11 = pmov %p3935_p2 }
 0x144   : > { %2993 = dma.done.wait (%p3938_p7), [#allocation17], 1536  }
 0x145   : > { %2995 = vsyncadd (%p3939_p11), [#allocation17], 4294965760  ;;  %p3940_p12 = pmov %p3935_p2 }
 0x146   : > { %p3941_p1 = pmov %p3935_p2 }
 0x147   : > { %2997 = dma.done.wait (%p3940_p12), [#allocation20], 16  }
 0x148   : > { %2999 = vsyncadd (%p3941_p1), [#allocation20], 4294967280  ;;  %s3567_s28 = scalar_lea.vmem [#allocation21], %s2175_s1  ;;  %s3942_s11 = sld [smem:[#allocation32_spill]] }
 0x14e   : > { %p2184_p4 = scmp.ne.s32.totalorder %s3942_s11, 0 }
 0x14f   : > { %v481_v0 = vld [vmem:[#allocation15] sm:$0xff] (!%p2184_p4)  ;;  %v482_v1 = vld [vmem:[#allocation15 + $0x8] sm:$0xff] (!%p2184_p4)  ;;  %v483_v2 = vld [vmem:[#allocation15 + $0x10] sm:$0xff] (!%p2184_p4)  ;;  %vm485_vm0 = vcmask (!%p2184_p4), 261120   ;;  %vm567_vm1 = vcmask (!%p2184_p4), 130048   ;;  %vm599_vm2 = vcmask (!%p2184_p4), 7168  }
 0x150   : > { %478 = sbr.rel (%p2184_p4) target bundleno = 682 (0x2aa), region = 88  ;;  %v2368_v3 = vpack.c.bf16 (!%p2184_p4), %v482_v1, %v481_v0  ;;  %v484_v4 = vld [vmem:[#allocation15 + $0x18] sm:$0xff] (!%p2184_p4)  ;;  %v3066_v8 = vmov (!%p2184_p4), -inf   ;;  %v3067_v9 = vmov (!%p2184_p4), 0.0   ;;  %s3068_s18 = smov (!%p2184_p4), 96  }
 0x151   : > { %v479_v5 = vld [vmem:[%s3536_s5] sm:$0xff] (!%p2184_p4)  ;;  %v2372_v6 = vpack.c.bf16 (!%p2184_p4), %v484_v4, %v483_v2  ;;  %v480_v7 = vld [vmem:[%s3536_s5 + $0x8] sm:$0xff] (!%p2184_p4)  ;;  %600 = vst.msk [vmem:[#allocation3] sm:$0xff] (!%p2184_p4), %vm599_vm2, %v3066_v8  ;;  %601 = vst.msk [vmem:[#allocation3 + $0x8] sm:$0xff] (!%p2184_p4), %vm599_vm2, %v3066_v8  ;;  %s3069_s26 = smov (!%p2184_p4), 112   ;;  %s3070_s29 = smov (!%p2184_p4), 80  }
 0x152   : > { %2280 = vmatprep.mubr.msk.f32.mxu0 (!%p2184_p4), %vm485_vm0, %v479_v5  ;;  %2369 = vmatprep.subr.bf16.mxu0 (!%p2184_p4), %v2368_v3  ;;  %602 = vst.msk [vmem:[#allocation3 + $0x10] sm:$0xff] (!%p2184_p4), %vm599_vm2, %v3066_v8  ;;  %603 = vst.msk [vmem:[#allocation3 + $0x18] sm:$0xff] (!%p2184_p4), %vm599_vm2, %v3066_v8 }
 0x153   : > { %2371 = vmatpush3.bf16.msra.mxu0 (!%p2184_p4), %v2368_v3  ;;  %604 = vst.msk [vmem:[#allocation3 + $0x20] sm:$0xff] (!%p2184_p4), %vm599_vm2, %v3066_v8  ;;  %605 = vst.msk [vmem:[#allocation3 + $0x28] sm:$0xff] (!%p2184_p4), %vm599_vm2, %v3066_v8 }
 0x154   : > { %2373 = vmatprep.subr.bf16.mxu0 (!%p2184_p4), %v2372_v6  ;;  %606 = vst.msk [vmem:[#allocation3 + $0x30] sm:$0xff] (!%p2184_p4), %vm599_vm2, %v3066_v8  ;;  %607 = vst.msk [vmem:[#allocation3 + $0x38] sm:$0xff] (!%p2184_p4), %vm599_vm2, %v3066_v8 }
 0x155   : > { %608 = vst.msk [vmem:[#allocation4] sm:$0xff] (!%p2184_p4), %vm599_vm2, %v3067_v9  ;;  %609 = vst.msk [vmem:[#allocation4 + $0x8] sm:$0xff] (!%p2184_p4), %vm599_vm2, %v3067_v9 }
 0x156   : > { %610 = vst.msk [vmem:[#allocation4 + $0x10] sm:$0xff] (!%p2184_p4), %vm599_vm2, %v3067_v9  ;;  %611 = vst.msk [vmem:[#allocation4 + $0x18] sm:$0xff] (!%p2184_p4), %vm599_vm2, %v3067_v9 }
 0x157   : > { %2375 = vmatpush3.bf16.msra.mxu0 %v2372_v6  ;;  %612 = vst.msk [vmem:[#allocation4 + $0x20] sm:$0xff] %vm599_vm2, %v3067_v9  ;;  %613 = vst.msk [vmem:[#allocation4 + $0x28] sm:$0xff] %vm599_vm2, %v3067_v9 }
 0x158   : > { %614 = vst.msk [vmem:[#allocation4 + $0x30] sm:$0xff] %vm599_vm2, %v3067_v9  ;;  %615 = vst.msk [vmem:[#allocation4 + $0x38] sm:$0xff] %vm599_vm2, %v3067_v9 }
 0x159   : > { %616 = vst.msk [vmem:[#allocation5] sm:$0xff] %vm567_vm1, %v3067_v9  ;;  %617 = vst.msk [vmem:[#allocation5 + $0x8] sm:$0xff] %vm567_vm1, %v3067_v9 }
 0x15a   : > { %2281 = vmatmul.mubr.msk.f32.vlgmr.msra.gmra.mrb[0].mxu0 %vm485_vm0, %v480_v7  ;;  %618 = vst.msk [vmem:[#allocation5 + $0x10] sm:$0xff] %vm567_vm1, %v3067_v9  ;;  %619 = vst.msk [vmem:[#allocation5 + $0x18] sm:$0xff] %vm567_vm1, %v3067_v9 }
 0x15b   : > { %620 = vst.msk [vmem:[#allocation5 + $0x20] sm:$0xff] %vm567_vm1, %v3067_v9  ;;  %621 = vst.msk [vmem:[#allocation5 + $0x28] sm:$0xff] %vm567_vm1, %v3067_v9 }
 0x15c   : > { %622 = vst.msk [vmem:[#allocation5 + $0x30] sm:$0xff] %vm567_vm1, %v3067_v9  ;;  %623 = vst.msk [vmem:[#allocation5 + $0x38] sm:$0xff] %vm567_vm1, %v3067_v9 }
 0x22d   : > { %v2282_v10 = vpop.f32.mrb[0].mxu0 }
 0x22e   : > { %569 = vst.msk [vmem:[#allocation2 + $0x8] sm:$0xff] %vm567_vm1, %v2282_v10  ;;  %583 = vrot.lane.b32.xlu1 %v2282_v10, %s3068_s18  ;;  %574 = vrot.lane.b32.xlu0 %v2282_v10, %s3069_s26  ;;  %v558_v11 = vpop.f32.mrb[1].mxu0 }
 0x22f   : > { %568 = vst.msk [vmem:[#allocation2] sm:$0xff] %vm567_vm1, %v558_v11 }
 0x232   : > { %581 = vrot.lane.b32.xlu1 %v558_v11, %s3068_s18  ;;  %572 = vrot.lane.b32.xlu0 %v558_v11, %s3069_s26 }
 0x236   : > { %592 = vrot.lane.b32.xlu1 %v2282_v10, %s3070_s29  ;;  %590 = vrot.lane.b32.xlu0 %v558_v11, %s3070_s29 }
 0x2a0   : > { %v584_v12 = vpop.permute.xlu1 %583  ;;  %v575_v13 = vpop.permute.xlu0 %574 }
 0x2a1   : > { %589 = vst.msk [vmem:[#allocation2 + $0x28] sm:$0xff] %vm567_vm1, %v584_v12  ;;  %580 = vst.msk [vmem:[#allocation2 + $0x18] sm:$0xff] %vm567_vm1, %v575_v13 }
 0x2a4   : > { %v582_v14 = vpop.permute.xlu1 %581  ;;  %v573_v15 = vpop.permute.xlu0 %572 }
 0x2a5   : > { %588 = vst.msk [vmem:[#allocation2 + $0x20] sm:$0xff] %vm567_vm1, %v582_v14  ;;  %579 = vst.msk [vmem:[#allocation2 + $0x10] sm:$0xff] %vm567_vm1, %v573_v15 }
 0x2a8   : > { %v593_v16 = vpop.permute.xlu1 %592  ;;  %v591_v17 = vpop.permute.xlu0 %590 }
 0x2a9   : > { %598 = vst.msk [vmem:[#allocation2 + $0x38] sm:$0xff] %vm567_vm1, %v593_v16  ;;  %597 = vst.msk [vmem:[#allocation2 + $0x30] sm:$0xff] %vm567_vm1, %v591_v17 }
 0x2aa PF: > { %v625_v18 = vld [vmem:[#allocation12] sm:$0xff]  ;;  %v626_v19 = vld [vmem:[#allocation12 + $0x8] sm:$0xff]  ;;  %v627_v20 = vld [vmem:[#allocation12 + $0x10] sm:$0xff]  ;;  %v3071_v21 = vmov 0.0|0.0   ;;  %vm3072_vm3 = vmmov 0   ;;  %v3073_v24 = vmov 0.0  }
 0x2ab   : > { %2376 = vmatprep.subr.bf16.mxu0 %v3071_v21  ;;  %v2377_v22 = vpack.c.bf16 %v626_v19, %v625_v18  ;;  %v628_v23 = vld [vmem:[#allocation12 + $0x18] sm:$0xff]  ;;  %2295 = vmatprep.mubr.msk.f32.mxu0 %vm3072_vm3, %v3073_v24  ;;  %v629_v29 = vld [vmem:[#allocation12 + $0x20] sm:$0xff]  ;;  %v630_v30 = vld [vmem:[#allocation12 + $0x28] sm:$0xff]  ;;  %vm638_vm4 = vcmask 392192   ;;  %vm716_vm5 = vcmask 261120   ;;  %vm792_vm6 = vcmask 130048  }
 0x2ac   : > { %2385 = vmatprep.subr.bf16.mxu1 %v3071_v21  ;;  %v712_v25 = vld [vmem:[#allocation16] sm:$0xff]  ;;  %v713_v26 = vld [vmem:[#allocation16 + $0x8] sm:$0xff]  ;;  %2306 = vmatprep.mubr.msk.f32.mxu1 %vm3072_vm3, %v3073_v24  ;;  %v2380_v27 = vpack.c.bf16 %v628_v23, %v627_v20  ;;  %v2383_v31 = vpack.c.bf16 %v630_v30, %v629_v29  ;;  %v714_v33 = vld [vmem:[#allocation16 + $0x10] sm:$0xff]  ;;  %s3074_s2 = smov 80   ;;  %s3075_s12 = smov 112   ;;  %vm879_vm7 = vcmask 64512  }
 0x2ad   : > { %2378 = vmatpush3.bf16.msra.mxu0 %v2377_v22  ;;  %v2386_v28 = vpack.c.bf16 %v713_v26, %v712_v25  ;;  %v624_v32 = vld [vmem:[%s411_s15] sm:$0xff]  ;;  %v790_v40 = vld [vmem:[#allocation2] sm:$0xff]  ;;  %v791_v43 = vld [vmem:[#allocation2 + $0x8] sm:$0xff]  ;;  %s3076_s25 = smov 96   ;;  %v3077_v57 = vmov 0   ;;  %vm922_vm8 = vcmask 7168  }
 0x2ae   : > { %2379 = vmatprep.subr.bf16.mxu0 %v3071_v21  ;;  %v715_v34 = vld [vmem:[#allocation16 + $0x18] sm:$0xff]  ;;  %v1031_v46 = vld [vmem:[#allocation2 + $0x18] sm:$0xff]  ;;  %v1271_v47 = vld [vmem:[#allocation2 + $0x20] sm:$0xff]  ;;  %2617 = vset.pattern.permute.xlu1 %v3077_v57  ;;  %s3078_s8 = smov 48   ;;  %s3079_s21 = smov 16  }
 0x2af   : > { %2387 = vmatpush3.bf16.msra.mxu1 %v2386_v28  ;;  %v2389_v35 = vpack.c.bf16 %v715_v34, %v714_v33  ;;  %v2187_v36 = vld [vmem:[#allocation13] ss:$0 sm:$0xff]  ;;  %v1272_v50 = vld [vmem:[#allocation2 + $0x28] sm:$0xff]  ;;  %2616 = vset.pattern.permute.xlu0 %v3077_v57  ;;  %v877_v7 = vld [vmem:[#allocation3] sm:$0xff]  ;;  %s3080_s1 = smov 64   ;;  %s3081_s4 = smov 32  }
 0x2b0   : > { %2388 = vmatprep.subr.bf16.mxu1 %v3071_v21  ;;  %v1030_v44 = vld [vmem:[#allocation2 + $0x10] sm:$0xff]  ;;  %v1513_v52 = vld [vmem:[#allocation2 + $0x38] sm:$0xff]  ;;  %v878_v6 = vld [vmem:[#allocation3 + $0x8] sm:$0xff]  ;;  %s3943_s5 = sld [smem:[#allocation32_spill]] }
 0x2b1   : > { %2381 = vmatpush3.bf16.msra.mxu0 %v2380_v27  ;;  %v1512_v51 = vld [vmem:[#allocation2 + $0x30] sm:$0xff]  ;;  %v1119_v16 = vld [vmem:[#allocation3 + $0x18] sm:$0xff]  ;;  %v1360_v22 = vld [vmem:[#allocation3 + $0x28] sm:$0xff] }
 0x2b2   : > { %2382 = vmatprep.subr.bf16.mxu0 %v3071_v21  ;;  %v1118_v17 = vld [vmem:[#allocation3 + $0x10] sm:$0xff]  ;;  %v1359_v23 = vld [vmem:[#allocation3 + $0x20] sm:$0xff]  ;;  %v3671_v30 = vld [vmem:[#allocation3 + $0x38] sm:$0xff] }
 0x2b3   : > { %2390 = vmatpush3.bf16.msra.mxu1 %v2389_v35 }
 0x2b5   : > { %2384 = vmatpush3.bf16.msra.mxu0 %v2383_v31  ;;  %v3674_v31 = vld [vmem:[#allocation3 + $0x30] sm:$0xff] }
 0x2b6   : > { %p2210_p8 = scmp.ne.s32.totalorder %s3943_s5, 2 }
 0x2b7   : > { %s3083_s24 = smov (!%p2210_p8), 16   ;;  %s3084_s19 = smov (!%p2210_p8), 32   ;;  %vm1802_vm9 = vcmask (!%p2210_p8), 261248   ;;  %vm1831_vm10 = vcmask (!%p2210_p8), 392448   ;;  %vm1860_vm11 = vcmask (!%p2210_p8), 523648   ;;  %vm1880_vm12 = vcmask (!%p2210_p8), 523264  }
 0x2b8   : > { %2296 = vmatmul.mubr.msk.f32.vlgmr.msra.gmra.mrb[0].mxu0 %vm638_vm4, %v624_v32  ;;  %s3085_s3 = smov (!%p2210_p8), 48  }
 0x38b   : > { %v708_v37 = vpop.f32.mrb[0].mxu0 }
 0x38c   : > { %v709_v38 = vadd.f32 %v2187_v36, %v708_v37  ;;  %v2297_v39 = vpop.f32.mrb[1].mxu0 }
 0x38e   : > { %2307 = vmatmul.mubr.msk.f32.vlgmr.msra.gmra.mrb[0].mxu1 %vm716_vm5, %v709_v38 }
 0x38f   : > { %2311 = vmatprep.mubr.msk.f32.mxu1 %vm792_vm6, %v790_v40 }
 0x461   : > { %v3608_v41 = vpop.f32.mrb[0].mxu1 }
 0x462   : > { %1514 = vrot.lane.b32.xlu1 %v3608_v41, %s3074_s2  ;;  %1032 = vrot.lane.b32.xlu0 %v3608_v41, %s3075_s12  ;;  %v2308_v42 = vpop.f32.mrb[1].mxu1 }
 0x463   : > { %2309 = vmatprep.subr.msk.mxu1 %vm792_vm6, %v3608_v41 }
 0x464   : > { %2310 = vmatpush3.xpose.msk.msra.mxu1 %vm792_vm6, %v3608_v41 }
 0x466   : > { %1273 = vrot.lane.b32.xlu0 %v3608_v41, %s3076_s25 }
 0x467   : > { %2312 = vmatmul.mubr.msk.f32.vlgmr.msra.gmra.mrb[2].mxu1 %vm792_vm6, %v791_v43 }
 0x468   : > { %2321 = vmatprep.mubr.msk.f32.mxu1 %vm792_vm6, %v1030_v44 }
 0x4d4   : > { %v1033_v45 = vpop.permute.xlu0 %1032  ;;  %v1515_v49 = vpop.permute.xlu1 %1514 }
 0x4d5   : > { %2319 = vmatprep.subr.msk.mxu1 %vm792_vm6, %v1033_v45 }
 0x4d6   : > { %2320 = vmatpush3.xpose.msk.msra.mxu1 %vm792_vm6, %v1033_v45 }
 0x4d8   : > { %v1274_v48 = vpop.permute.xlu0 %1273 }
 0x4d9   : > { %2322 = vmatmul.mubr.msk.f32.vlgmr.msra.gmra.mrb[4].mxu1 %vm792_vm6, %v1031_v46  ;;  %2329 = vmatprep.subr.msk.mxu1 %vm792_vm6, %v1274_v48 }
 0x4da   : > { %2330 = vmatpush3.xpose.msk.msra.mxu1 %vm792_vm6, %v1274_v48  ;;  %2331 = vmatprep.mubr.msk.f32.mxu1 %vm792_vm6, %v1271_v47 }
 0x4db   : > { %2339 = vmatprep.subr.msk.mxu1 %vm792_vm6, %v1515_v49 }
 0x4dd   : > { %2332 = vmatmul.mubr.msk.f32.vlgmr.msra.gmra.mrb[6].mxu1 %vm792_vm6, %v1272_v50 }
 0x4de   : > { %2340 = vmatpush3.xpose.msk.msra.mxu1 %vm792_vm6, %v1515_v49  ;;  %2341 = vmatprep.mubr.msk.f32.mxu1 %vm792_vm6, %v1512_v51 }
 0x4e1   : > { %2342 = vmatmul.mubr.msk.f32.vlgmr.msra.gmra.mrb[8].mxu1 %vm792_vm6, %v1513_v52 }
 0x53a   : > { %v3630_v53 = vpop.f32.mrb[2].mxu1 }
 0x53b   : > { %v883_v54 = vsel %vm879_vm7, %v3630_v53, -inf  ;;  %v3634_v55 = vpop.f32.mrb[3].mxu1 }
 0x53c   : > { %884 = vmax.xlane.f32.xlu0 %v883_v54  ;;  %v880_v56 = vsel %vm879_vm7, %v3634_v55, -inf }
 0x53d   : > { %881 = vmax.xlane.f32.xlu1 %v880_v56 }
 0x5ac   : > { %v3638_v58 = vpop.f32.mrb[4].mxu1 }
 0x5ad   : > { %v3640_v59 = vpop.f32.mrb[5].mxu1  ;;  %v1123_v60 = vsel %vm879_vm7, %v3638_v58, -inf }
 0x5ae   : > { %1124 = vmax.xlane.f32.xlu1 %v1123_v60  ;;  %v1120_v61 = vsel %vm879_vm7, %v3640_v59, -inf }
 0x5af   : > { %1121 = vmax.xlane.f32.xlu0 %v1120_v61 }
 0x5b0   : > { %v3646_v62 = vpop.f32.mrb[6].mxu1 }
 0x5b1   : > { %v3648_v63 = vpop.f32.mrb[7].mxu1  ;;  %v1364_v0 = vsel %vm879_vm7, %v3646_v62, -inf }
 0x5b2   : > { %v1361_v1 = vsel %vm879_vm7, %v3648_v63, -inf  ;;  %1365 = vmax.xlane.f32.xlu1 %v1364_v0 }
 0x5b3   : > { %1362 = vmax.xlane.f32.xlu0 %v1361_v1 }
 0x5b4   : > { %v3654_v2 = vpop.f32.mrb[8].mxu1 }
 0x5b5   : > { %v3656_v3 = vpop.f32.mrb[9].mxu1  ;;  %v1605_v4 = vsel %vm879_vm7, %v3654_v2, -inf }
 0x5b6   : > { %v1602_v5 = vsel %vm879_vm7, %v3656_v3, -inf  ;;  %1606 = vmax.xlane.f32.xlu1 %v1605_v4 }
 0x5b7   : > { %1603 = vmax.xlane.f32.xlu0 %v1602_v5 }
 0x5c9   : > { %v885_v8 = vpop.xlane.xlu0 %884 }
 0x5ca   : > { %v887_v9 = vmax.f32 %v878_v6, %v885_v8  ;;  %v882_v10 = vpop.xlane.xlu1 %881 }
 0x5cb   : > { %v886_v11 = vmax.f32 %v877_v7, %v882_v10 }
 0x5cc   : > { %v889_v12 = vsub.f32 %v878_v6, %v887_v9  ;;  %1028 = vst.msk [vmem:[#allocation3 + $0x8] sm:$0xff] %vm922_vm8, %v887_v9  ;;  %901 = vperm.xlu1 %2617, %v887_v9  }
 0x5cd   : > { %v888_v13 = vsub.f32 %v877_v7, %v886_v11  ;;  %1027 = vst.msk [vmem:[#allocation3] sm:$0xff] %vm922_vm8, %v886_v11  ;;  %896 = vperm.xlu0 %2616, %v886_v11  }
 0x5ce   : > { %v892_v44 = vmul.f32 1.442695, %v889_v12 }
 0x5cf   : > { %v890_v14 = vmul.f32 1.442695, %v888_v13 }
 0x5d1   : > { %2618 = vpow2.f32 %v890_v14  ;;  %1165 = vrot.lane.b32.xlu0 %v3608_v41, %s3078_s8 }
 0x5d5   : > { %1647 = vrot.lane.b32.xlu0 %v3608_v41, %s3079_s21 }
 0x5db   : > { %v3666_v15 = vpop.eup %2618 }
 0x5dc   : > { %1013 = vperm.xlu0 %2616, %v3666_v15  }
 0x63b   : > { %v1125_v18 = vpop.xlane.xlu1 %1124 }
 0x63c   : > { %v1127_v19 = vmax.f32 %v1119_v16, %v1125_v18  ;;  %v1122_v20 = vpop.xlane.xlu0 %1121 }
 0x63d   : > { %v1126_v21 = vmax.f32 %v1118_v17, %v1122_v20 }
 0x63e   : > { %1269 = vst.msk [vmem:[#allocation3 + $0x18] sm:$0xff] %vm922_vm8, %v1127_v19  ;;  %1141 = vperm.xlu1 %2617, %v1127_v19   ;;  %v1129_v45 = vsub.f32 %v1119_v16, %v1127_v19 }
 0x63f   : > { %v1128_v24 = vsub.f32 %v1118_v17, %v1126_v21  ;;  %1268 = vst.msk [vmem:[#allocation3 + $0x10] sm:$0xff] %vm922_vm8, %v1126_v21  ;;  %v1366_v25 = vpop.xlane.xlu1 %1365 }
 0x640   : > { %v1363_v26 = vpop.xlane.xlu0 %1362  ;;  %v1368_v27 = vmax.f32 %v1360_v22, %v1366_v25  ;;  %v1132_v48 = vmul.f32 1.442695, %v1129_v45 }
 0x641   : > { %v1130_v28 = vmul.f32 1.442695, %v1128_v24  ;;  %v1367_v29 = vmax.f32 %v1359_v23, %v1363_v26 }
 0x642   : > { %1136 = vperm.xlu1 %2617, %v1126_v21   ;;  %1510 = vst.msk [vmem:[#allocation3 + $0x28] sm:$0xff] %vm922_vm8, %v1368_v27  ;;  %v1370_v49 = vsub.f32 %v1360_v22, %v1368_v27 }
 0x643   : > { %2620 = vpow2.f32 %v1130_v28  ;;  %v1369_v32 = vsub.f32 %v1359_v23, %v1367_v29  ;;  %1509 = vst.msk [vmem:[#allocation3 + $0x20] sm:$0xff] %vm922_vm8, %v1367_v29  ;;  %v1607_v33 = vpop.xlane.xlu1 %1606 }
 0x644   : > { %v3678_v34 = vmax.f32 %v3671_v30, %v1607_v33  ;;  %v1604_v35 = vpop.xlane.xlu0 %1603  ;;  %v1373_v50 = vmul.f32 1.442695, %v1370_v49 }
 0x645   : > { %v1371_v36 = vmul.f32 1.442695, %v1369_v32  ;;  %v3681_v37 = vmax.f32 %v3674_v31, %v1604_v35 }
 0x646   : > { %1382 = vperm.xlu1 %2617, %v1368_v27   ;;  %v1611_v38 = vsub.f32 %v3671_v30, %v3678_v34  ;;  %1751 = vst.msk [vmem:[#allocation3 + $0x38] sm:$0xff] %vm922_vm8, %v3678_v34 }
 0x647   : > { %2622 = vpow2.f32 %v1371_v36  ;;  %v1610_v39 = vsub.f32 %v3674_v31, %v3681_v37  ;;  %1750 = vst.msk [vmem:[#allocation3 + $0x30] sm:$0xff] %vm922_vm8, %v3681_v37 }
 0x648   : > { %v1614_v32 = vmul.f32 1.442695, %v1611_v38 }
 0x649   : > { %v1612_v35 = vmul.f32 1.442695, %v1610_v39 }
 0x64a   : > { %1377 = vperm.xlu1 %2617, %v1367_v29  }
 0x64b   : > { %v902_v51 = vpop.permute.xlu1 %901 }
 0x64c   : > { %v897_v40 = vpop.permute.xlu0 %896  ;;  %v905_v54 = vsub.f32 %v3630_v53, %v902_v51 }
 0x64d   : > { %v3691_v42 = vpop.eup %2620  ;;  %v904_v43 = vsub.f32 %v3634_v55, %v897_v40 }
 0x64e   : > { %1254 = vperm.xlu0 %2616, %v3691_v42   ;;  %1618 = vperm.xlu1 %2617, %v3681_v37   ;;  %v908_v56 = vmul.f32 1.442695, %v905_v54  ;;  %v910_v37 = vld [vmem:[#allocation4] sm:$0xff] }
 0x64f   : > { %v906_v46 = vmul.f32 1.442695, %v904_v43  ;;  %v911_v43 = vld [vmem:[#allocation4 + $0x8] sm:$0xff]  ;;  %v912_v39 = vmul.f32 %v3666_v15, %v910_v37 }
 0x650   : > { %v1166_v24 = vpop.permute.xlu0 %1165 }
 0x651   : > { %v3696_v47 = vpop.eup %2622  ;;  %2624 = vpow2.f32 %v906_v46 }
 0x652   : > { %1495 = vperm.xlu0 %2616, %v3696_v47   ;;  %1623 = vperm.xlu1 %2617, %v3678_v34   ;;  %2626 = vpow2.f32 %v892_v44 }
 0x653   : > { %2628 = vpow2.f32 %v1132_v48 }
 0x654   : > { %2630 = vpow2.f32 %v1373_v50  ;;  %v1648_v27 = vpop.permute.xlu0 %1647 }
 0x655   : > { %2632 = vpow2.f32 %v908_v56 }
 0x656   : > { %925 = vrot.lane.b32.xlu1 %v3608_v41, %s3080_s1 }
 0x65a   : > { %1406 = vrot.lane.b32.xlu1 %v3608_v41, %s3081_s4 }
 0x65b   : > { %v2625_v52 = vpop.eup %2624  ;;  %v1014_v30 = vpop.permute.xlu0 %1013 }
 0x65c   : > { %2316 = vmatprep.mubr.msk.f32.mxu0 %vm879_vm7, %v2625_v52  ;;  %v3704_v55 = vpop.eup %2626  ;;  %v914_v53 = vsel %vm879_vm7, %v2625_v52, 0.0  ;;  %v1152_v52 = vld [vmem:[#allocation4 + $0x18] sm:$0xff] }
 0x65d   : > { %v3707_v57 = vpop.eup %2628  ;;  %v913_v44 = vmul.f32 %v3704_v55, %v911_v43 }
 0x65e   : > { %1018 = vperm.xlu1 %2617, %v3704_v55   ;;  %v3710_v60 = vpop.eup %2630  ;;  %v1154_v54 = vmul.f32 %v3707_v57, %v1152_v52 }
 0x65f   : > { %v2633_v41 = vpop.eup %2632 }
 0x660   : > { %v917_v61 = vsel %vm879_vm7, %v2633_v41, 0.0 }
 0x662   : > { %1259 = vperm.xlu1 %2617, %v3707_v57  }
 0x666   : > { %1500 = vperm.xlu1 %2617, %v3710_v60  }
 0x671   : > { %918 = vadd.xlane.f32.xlu0 %v917_v61 }
 0x68a   : > { %915 = vadd.xlane.f32.xlu1 %v914_v53 }
 0x6bd   : > { %v1142_v0 = vpop.permute.xlu1 %1141 }
 0x6be   : > { %v1145_v1 = vsub.f32 %v3638_v58, %v1142_v0  ;;  %v1393_v0 = vld [vmem:[#allocation4 + $0x28] sm:$0xff] }
 0x6bf   : > { %v1395_v15 = vmul.f32 %v3710_v60, %v1393_v0 }
 0x6c0   : > { %v1148_v4 = vmul.f32 1.442695, %v1145_v1 }
 0x6c1   : > { %v1137_v5 = vpop.permute.xlu1 %1136 }
 0x6c2   : > { %2634 = vpow2.f32 %v1148_v4  ;;  %v1144_v6 = vsub.f32 %v3640_v59, %v1137_v5  ;;  %v1392_v5 = vld [vmem:[#allocation4 + $0x20] sm:$0xff] }
 0x6c3   : > { %v1394_v57 = vmul.f32 %v3696_v47, %v1392_v5  ;;  %v1865_v5 = vld [vmem:[#allocation18] sm:$0xff] (!%p2210_p8) }
 0x6c4   : > { %v1146_v7 = vmul.f32 1.442695, %v1144_v6 }
 0x6c5   : > { %v1383_v8 = vpop.permute.xlu1 %1382 }
 0x6c6   : > { %2636 = vpow2.f32 %v1146_v7  ;;  %v1386_v9 = vsub.f32 %v3646_v62, %v1383_v8  ;;  %v1633_v8 = vld [vmem:[#allocation4 + $0x30] sm:$0xff] }
 0x6c8   : > { %v1389_v10 = vmul.f32 1.442695, %v1386_v9 }
 0x6c9   : > { %v1378_v11 = vpop.permute.xlu1 %1377 }
 0x6ca   : > { %2638 = vpow2.f32 %v1389_v10  ;;  %v1385_v12 = vsub.f32 %v3648_v63, %v1378_v11  ;;  %v1634_v11 = vld [vmem:[#allocation4 + $0x38] sm:$0xff] }
 0x6cc   : > { %v2635_v13 = vpop.eup %2634  ;;  %v1387_v14 = vmul.f32 1.442695, %v1385_v12 }
 0x6cd   : > { %v1619_v16 = vpop.permute.xlu1 %1618  ;;  %v1158_v58 = vsel %vm879_vm7, %v2635_v13, 0.0  ;;  %v1255_v34 = vpop.permute.xlu0 %1254 }
 0x6ce   : > { %2640 = vpow2.f32 %v1387_v14  ;;  %v1626_v17 = vsub.f32 %v3656_v3, %v1619_v16  ;;  %1159 = vadd.xlane.f32.xlu0 %v1158_v58  ;;  %v1010_v16 = vld [vmem:[#allocation5 + $0x8] sm:$0xff]  ;;  %v1009_v58 = vld [vmem:[#allocation5] sm:$0xff] }
 0x6cf   : > { %v1021_v47 = vmul.f32 %v1014_v30, %v1009_v58 }
 0x6d0   : > { %v2637_v59 = vpop.eup %2636  ;;  %v1628_v18 = vmul.f32 1.442695, %v1626_v17 }
 0x6d1   : > { %v1624_v19 = vpop.permute.xlu1 %1623  ;;  %v1155_v20 = vsel %vm879_vm7, %v2637_v59, 0.0  ;;  %v3740_v40 = vpop.permute.xlu0 %1495 }
 0x6d2   : > { %2642 = vpow2.f32 %v1628_v18  ;;  %v1627_v62 = vsub.f32 %v3654_v2, %v1624_v19  ;;  %1156 = vadd.xlane.f32.xlu1 %v1155_v20  ;;  %v1250_v19 = vld [vmem:[#allocation5 + $0x10] sm:$0xff] }
 0x6d4   : > { %v2639_v21 = vpop.eup %2638  ;;  %v1630_v63 = vmul.f32 1.442695, %v1627_v62 }
 0x6d5   : > { %v926_v22 = vpop.permute.xlu1 %925  ;;  %v1399_v23 = vsel %vm879_vm7, %v2639_v21, 0.0 }
 0x6d6   : > { %2644 = vpow2.f32 %v1630_v63  ;;  %1400 = vadd.xlane.f32.xlu0 %v1399_v23  ;;  %2314 = vmatprep.subr.mxu0 %v926_v22  ;;  %v1492_v23 = vld [vmem:[#allocation5 + $0x28] sm:$0xff] }
 0x6d7   : > { %2315 = vmatpush3.msra.mxu0 %v926_v22  ;;  %2646 = vpow2.f32 %v1614_v32  ;;  %v1262_v22 = vmul.f32 %v1255_v34, %v1250_v19 }
 0x6d8   : > { %v2641_v3 = vpop.eup %2640  ;;  %2317 = vmatmul.mubr.msk.f32.vlgmr.msra.gmra.mrb[2].mxu0 %vm879_vm7, %v2633_v41  ;;  %2324 = vmatprep.subr.mxu0 %v1166_v24  ;;  %2648 = vpow2.f32 %v1612_v35  ;;  %v1151_v41 = vld [vmem:[#allocation4 + $0x10] sm:$0xff] }
 0x6d9   : > { %2325 = vmatpush3.msra.mxu0 %v1166_v24  ;;  %2326 = vmatprep.mubr.msk.f32.mxu0 %vm879_vm7, %v2637_v59  ;;  %v1407_v25 = vpop.permute.xlu1 %1406  ;;  %v1396_v2 = vsel %vm879_vm7, %v2641_v3, 0.0  ;;  %v1153_v61 = vmul.f32 %v3691_v42, %v1151_v41  ;;  %v1251_v59 = vld [vmem:[#allocation5 + $0x18] sm:$0xff]  ;;  %v1732_v35 = vld [vmem:[#allocation5 + $0x30] sm:$0xff] }
 0x6da   : > { %1397 = vadd.xlane.f32.xlu1 %v1396_v2  ;;  %2334 = vmatprep.subr.mxu0 %v1407_v25 }
 0x6dc   : > { %v2643_v26 = vpop.eup %2642  ;;  %2327 = vmatmul.mubr.msk.f32.vlgmr.msra.gmra.mrb[4].mxu0 %vm879_vm7, %v2635_v13 }
 0x6dd   : > { %2335 = vmatpush3.msra.mxu0 %v1407_v25  ;;  %2336 = vmatprep.mubr.msk.f32.mxu0 %vm879_vm7, %v2641_v3  ;;  %v1637_v28 = vsel %vm879_vm7, %v2643_v26, 0.0  ;;  %v1019_v48 = vpop.permute.xlu1 %1018  ;;  %v1491_v3 = vld [vmem:[#allocation5 + $0x20] sm:$0xff] }
 0x6de   : > { %2344 = vmatprep.subr.mxu0 %v1648_v27  ;;  %1638 = vadd.xlane.f32.xlu1 %v1637_v28  ;;  %v1022_v17 = vmul.f32 %v1019_v48, %v1010_v16  ;;  %v1503_v28 = vmul.f32 %v3740_v40, %v1491_v3 }
 0x6e0   : > { %v2645_v29 = vpop.eup %2644  ;;  %2337 = vmatmul.mubr.msk.f32.vlgmr.msra.gmra.mrb[6].mxu0 %vm879_vm7, %v2639_v21 }
 0x6e1   : > { %2345 = vmatpush3.msra.mxu0 %v1648_v27  ;;  %2346 = vmatprep.mubr.msk.f32.mxu0 %vm879_vm7, %v2643_v26  ;;  %v1640_v33 = vsel %vm879_vm7, %v2645_v29, 0.0  ;;  %v2647_v36 = vpop.eup %2646  ;;  %v1260_v49 = vpop.permute.xlu1 %1259 }
 0x6e2   : > { %1641 = vadd.xlane.f32.xlu0 %v1640_v33  ;;  %v2649_v38 = vpop.eup %2648  ;;  %v1636_v13 = vmul.f32 %v2647_v36, %v1634_v11  ;;  %v1263_v63 = vmul.f32 %v1260_v49, %v1251_v59  ;;  %v1869_v11 = vld [vmem:[#allocation18 + $0x20] sm:$0xff] (!%p2210_p8) }
 0x6e3   : > { %v1635_v42 = vmul.f32 %v2649_v38, %v1633_v8  ;;  %v1868_v8 = vld [vmem:[#allocation18 + $0x18] sm:$0xff] (!%p2210_p8) }
 0x6e4   : > { %2347 = vmatmul.mubr.msk.f32.vlgmr.msra.gmra.mrb[8].mxu0 %vm879_vm7, %v2645_v29  ;;  %v1733_v29 = vld [vmem:[#allocation5 + $0x38] sm:$0xff] }
 0x6e5   : > { %v1501_v31 = vpop.permute.xlu1 %1500 }
 0x6e6   : > { %v1504_v27 = vmul.f32 %v1501_v31, %v1492_v23 }
 0x6ef   : > { %1741 = vperm.xlu1 %2617, %v2647_v36  }
 0x6f8   : > { %1736 = vperm.xlu0 %2616, %v2649_v38  }
 0x6fe   : > { %v919_v45 = vpop.xlane.xlu0 %918 }
 0x6ff   : > { %v921_v46 = vadd.f32 %v919_v45, %v913_v44 }
 0x701   : > { %924 = vst.msk [vmem:[#allocation4 + $0x8] sm:$0xff] %vm922_vm8, %v921_v46 }
 0x717   : > { %v916_v50 = vpop.xlane.xlu1 %915 }
 0x718   : > { %v920_v51 = vadd.f32 %v916_v50, %v912_v39  ;;  %v3082_v39 = vmov (!%p2210_p8), 0  }
 0x719   : > { %2651 = vset.pattern.permute.xlu1 (!%p2210_p8), %v3082_v39  ;;  %2650 = vset.pattern.permute.xlu0 (!%p2210_p8), %v3082_v39 }
 0x71a   : > { %923 = vst.msk [vmem:[#allocation4] sm:$0xff] %vm922_vm8, %v920_v51 }
 0x75b   : > { %v1160_v56 = vpop.xlane.xlu0 %1159 }
 0x75c   : > { %v1162_v55 = vadd.f32 %v1160_v56, %v1154_v54  ;;  %v1759_v54 = vld [vmem:[#allocation4 + $0x8] sm:$0xff] (!%p2210_p8)  ;;  %v1758_v56 = vld [vmem:[#allocation4] sm:$0xff] (!%p2210_p8) }
 0x75e   : > { %1164 = vst.msk [vmem:[#allocation4 + $0x18] sm:$0xff] %vm922_vm8, %v1162_v55 }
 0x75f   : > { %v1157_v53 = vpop.xlane.xlu1 %1156 }
 0x760   : > { %v1161_v1 = vadd.f32 %v1157_v53, %v1153_v61 }
 0x762   : > { %1163 = vst.msk [vmem:[#allocation4 + $0x10] sm:$0xff] %vm922_vm8, %v1161_v1 }
 0x763   : > { %v1401_v4 = vpop.xlane.xlu0 %1400 }
 0x764   : > { %v1403_v6 = vadd.f32 %v1401_v4, %v1395_v15 }
 0x765   : > { %v1779_v50 = vld [vmem:[#allocation4 + $0x18] sm:$0xff] (!%p2210_p8) }
 0x766   : > { %1405 = vst.msk [vmem:[#allocation4 + $0x28] sm:$0xff] %vm922_vm8, %v1403_v6  ;;  %v1866_v6 = vld [vmem:[#allocation18 + $0x8] sm:$0xff] (!%p2210_p8) }
 0x767   : > { %v1398_v7 = vpop.xlane.xlu1 %1397 }
 0x768   : > { %v1402_v9 = vadd.f32 %v1398_v7, %v1394_v57  ;;  %v2391_v57 = vpack.c.bf16 (!%p2210_p8), %v1866_v6, %v1865_v5  ;;  %v1867_v7 = vld [vmem:[#allocation18 + $0x10] sm:$0xff] (!%p2210_p8) }
 0x769   : > { %v1778_v31 = vld [vmem:[#allocation4 + $0x10] sm:$0xff] (!%p2210_p8) }
 0x76a   : > { %1404 = vst.msk [vmem:[#allocation4 + $0x20] sm:$0xff] %vm922_vm8, %v1402_v9  ;;  %2392 = vmatprep.subr.bf16.mxu0 (!%p2210_p8), %v2391_v57  ;;  %v2395_v9 = vpack.c.bf16 (!%p2210_p8), %v1868_v8, %v1867_v7 }
 0x76b   : > { %v1639_v10 = vpop.xlane.xlu1 %1638  ;;  %2394 = vmatpush3.bf16.msra.mxu0 (!%p2210_p8), %v2391_v57 }
 0x76c   : > { %v1643_v12 = vadd.f32 %v1639_v10, %v1635_v42  ;;  %2396 = vmatprep.subr.bf16.mxu0 (!%p2210_p8), %v2395_v9 }
 0x76d   : > { %v1808_v37 = vld [vmem:[#allocation4 + $0x28] sm:$0xff] (!%p2210_p8) }
 0x76e   : > { %1645 = vst.msk [vmem:[#allocation4 + $0x30] sm:$0xff] %vm922_vm8, %v1643_v12  ;;  %v1870_v12 = vld [vmem:[#allocation18 + $0x28] sm:$0xff] (!%p2210_p8) }
 0x76f   : > { %v1642_v60 = vpop.xlane.xlu0 %1641  ;;  %v1742_v32 = vpop.permute.xlu1 %1741  ;;  %2398 = vmatpush3.bf16.msra.mxu0 (!%p2210_p8), %v2395_v9 }
 0x770   : > { %v1644_v14 = vadd.f32 %v1642_v60, %v1636_v13  ;;  %v1745_v43 = vmul.f32 %v1742_v32, %v1733_v29 }
 0x771   : > { %v1807_v49 = vld [vmem:[#allocation4 + $0x20] sm:$0xff] (!%p2210_p8) }
 0x772   : > { %1646 = vst.msk [vmem:[#allocation4 + $0x38] sm:$0xff] %vm922_vm8, %v1644_v14  ;;  %2652 = vrcp.f32 (!%p2210_p8), %v1807_v49  ;;  %v2399_v14 = vpack.c.bf16 (!%p2210_p8), %v1870_v12, %v1869_v11 }
 0x773   : > { %2654 = vrcp.f32 (!%p2210_p8), %v1778_v31 }
 0x774   : > { %2656 = vrcp.f32 (!%p2210_p8), %v1808_v37  ;;  %2400 = vmatprep.subr.bf16.mxu0 (!%p2210_p8), %v2399_v14 }
 0x775   : > { %2658 = vrcp.f32 (!%p2210_p8), %v1779_v50  ;;  %v1836_v52 = vld [vmem:[#allocation4 + $0x30] sm:$0xff] (!%p2210_p8)  ;;  %2402 = vmatpush3.bf16.msra.mxu0 (!%p2210_p8), %v2399_v14 }
 0x777   : > { %v1737_v36 = vpop.permute.xlu0 %1736 }
 0x778   : > { %v1744_v44 = vmul.f32 %v1737_v36, %v1732_v35 }
 0x779   : > { %v1837_v51 = vld [vmem:[#allocation4 + $0x38] sm:$0xff] (!%p2210_p8) }
 0x77a   : > { %2660 = vrcp.f32 (!%p2210_p8), %v1837_v51 }
 0x77b   : > { %2662 = vrcp.f32 (!%p2210_p8), %v1836_v52 }
 0x77c   : > { %v2653_v41 = vpop.eup (!%p2210_p8), %2652  ;;  %2664 = vrcp.f32 (!%p2210_p8), %v1759_v54 }
 0x77d   : > { %v2655_v55 = vpop.eup (!%p2210_p8), %2654  ;;  %1813 = vperm.xlu1 (!%p2210_p8), %2651, %v2653_v41   ;;  %2666 = vrcp.f32 (!%p2210_p8), %v1758_v56 }
 0x77e   : > { %v2657_v61 = vpop.eup (!%p2210_p8), %2656  ;;  %1784 = vperm.xlu0 (!%p2210_p8), %2650, %v2655_v55  }
 0x77f   : > { %v2659_v53 = vpop.eup (!%p2210_p8), %2658 }
 0x781   : > { %1818 = vperm.xlu1 (!%p2210_p8), %2651, %v2657_v61  }
 0x782   : > { %1789 = vperm.xlu0 (!%p2210_p8), %2650, %v2659_v53  }
 0x784   : > { %v2661_v0 = vpop.eup (!%p2210_p8), %2660 }
 0x785   : > { %v2663_v1 = vpop.eup (!%p2210_p8), %2662  ;;  %1847 = vperm.xlu1 (!%p2210_p8), %2651, %v2661_v0  }
 0x786   : > { %v2665_v15 = vpop.eup (!%p2210_p8), %2664  ;;  %1842 = vperm.xlu0 (!%p2210_p8), %2650, %v2663_v1  }
 0x787   : > { %v2667_v4 = vpop.eup (!%p2210_p8), %2666 }
 0x789   : > { %1769 = vperm.xlu1 (!%p2210_p8), %2651, %v2665_v15  }
 0x78a   : > { %1764 = vperm.xlu0 (!%p2210_p8), %2650, %v2667_v4  }
 0x7ab   : > { %v2318_v18 = vpop.f32.mrb[2].mxu0 }
 0x7ac   : > { %v1024_v20 = vadd.f32 %v2318_v18, %v1022_v17  ;;  %v1000_v62 = vpop.f32.mrb[3].mxu0  ;;  %v1871_v17 = vld [vmem:[#allocation18 + $0x30] sm:$0xff] (!%p2210_p8) }
 0x7ad   : > { %v1023_v21 = vadd.f32 %v1021_v47, %v1000_v62  ;;  %v1872_v47 = vld [vmem:[#allocation18 + $0x38] sm:$0xff] (!%p2210_p8) }
 0x7ae   : > { %1026 = vst.msk [vmem:[#allocation5 + $0x8] sm:$0xff] %vm792_vm6, %v1024_v20  ;;  %v2403_v19 = vpack.c.bf16 (!%p2210_p8), %v1872_v47, %v1871_v17 }
 0x7af   : > { %1025 = vst.msk [vmem:[#allocation5] sm:$0xff] %vm792_vm6, %v1023_v21  ;;  %v2328_v24 = vpop.f32.mrb[4].mxu0 }
 0x7b0   : > { %v1265_v25 = vadd.f32 %v2328_v24, %v1263_v63  ;;  %v1240_v2 = vpop.f32.mrb[5].mxu0  ;;  %2404 = vmatprep.subr.bf16.mxu0 (!%p2210_p8), %v2403_v19 }
 0x7b1   : > { %v1264_v26 = vadd.f32 %v1262_v22, %v1240_v2  ;;  %2406 = vmatpush3.bf16.msra.mxu0 (!%p2210_p8), %v2403_v19 }
 0x7b2   : > { %1267 = vst.msk [vmem:[#allocation5 + $0x18] sm:$0xff] %vm792_vm6, %v1265_v25 }
 0x7b3   : > { %1266 = vst.msk [vmem:[#allocation5 + $0x10] sm:$0xff] %vm792_vm6, %v1264_v26  ;;  %v2338_v33 = vpop.f32.mrb[6].mxu0 }
 0x7b4   : > { %v1506_v30 = vadd.f32 %v2338_v33, %v1504_v27  ;;  %v1481_v34 = vpop.f32.mrb[7].mxu0 }
 0x7b5   : > { %v1505_v38 = vadd.f32 %v1503_v28, %v1481_v34  ;;  %1755 = sbr.rel (%p2210_p8) target bundleno = 2399 (0x95f), region = 92  ;;  %v1757_v25 = vld [vmem:[#allocation5 + $0x8] sm:$0xff] (!%p2210_p8) }
 0x7b6   : > { %1508 = vst.msk [vmem:[#allocation5 + $0x28] sm:$0xff] %vm792_vm6, %v1506_v30  ;;  %v1756_v26 = vld [vmem:[#allocation5] sm:$0xff] (!%p2210_p8) }
 0x7b7   : > { %1507 = vst.msk [vmem:[#allocation5 + $0x20] sm:$0xff] %vm792_vm6, %v1505_v38  ;;  %v2348_v45 = vpop.f32.mrb[8].mxu0 }
 0x7b8   : > { %v1747_v46 = vadd.f32 %v2348_v45, %v1745_v43  ;;  %v1722_v48 = vpop.f32.mrb[9].mxu0 }
 0x7b9   : > { %v1746_v40 = vadd.f32 %v1744_v44, %v1722_v48  ;;  %v1777_v58 = vld [vmem:[#allocation5 + $0x18] sm:$0xff] (!%p2210_p8) }
 0x7ba   : > { %1749 = vst.msk [vmem:[#allocation5 + $0x38] sm:$0xff] %vm792_vm6, %v1747_v46  ;;  %v1776_v42 = vld [vmem:[#allocation5 + $0x10] sm:$0xff] (!%p2210_p8) }
 0x7bb   : > { %1748 = vst.msk [vmem:[#allocation5 + $0x30] sm:$0xff] %vm792_vm6, %v1746_v40  ;;  %v2211_v46 = vld [vmem:[#allocation19] ss:$0 sm:$0xff] (!%p2210_p8) }
 0x7bd   : > { %v1806_v21 = vld [vmem:[#allocation5 + $0x28] sm:$0xff] }
 0x7be   : > { %v1805_v13 = vld [vmem:[#allocation5 + $0x20] sm:$0xff] }
 0x7c1   : > { %v1835_v2 = vld [vmem:[#allocation5 + $0x38] sm:$0xff] }
 0x7c2   : > { %v1834_v63 = vld [vmem:[#allocation5 + $0x30] sm:$0xff] }
 0x7fc   : > { %v1814_v10 = vpop.permute.xlu1 %1813 }
 0x7fd   : > { %v1785_v60 = vpop.permute.xlu0 %1784  ;;  %v1821_v59 = vmul.f32 %v1814_v10, %v1805_v13 }
 0x7fe   : > { %v1792_v16 = vmul.f32 %v1785_v60, %v1776_v42 }
 0x800   : > { %1796 = vrot.lane.b32.xlu0 %v1792_v16, %s3083_s24  ;;  %v1819_v18 = vpop.permute.xlu1 %1818 }
 0x801   : > { %v1790_v20 = vpop.permute.xlu0 %1789  ;;  %v1822_v24 = vmul.f32 %v1819_v18, %v1806_v21 }
 0x802   : > { %v1793_v62 = vmul.f32 %v1790_v20, %v1777_v58 }
 0x804   : > { %1798 = vrot.lane.b32.xlu1 %v1793_v62, %s3083_s24  ;;  %1825 = vrot.lane.b32.xlu0 %v1821_v59, %s3084_s19  ;;  %v1848_v22 = vpop.permute.xlu1 %1847 }
 0x805   : > { %v1843_v23 = vpop.permute.xlu0 %1842  ;;  %v1851_v32 = vmul.f32 %v1848_v22, %v1835_v2 }
 0x806   : > { %v1850_v3 = vmul.f32 %v1843_v23, %v1834_v63 }
 0x808   : > { %1827 = vrot.lane.b32.xlu1 %v1822_v24, %s3084_s19  ;;  %1854 = vrot.lane.b32.xlu0 %v1850_v3, %s3085_s3  ;;  %v1770_v27 = vpop.permute.xlu1 %1769 }
 0x809   : > { %v1773_v28 = vmul.f32 %v1770_v27, %v1757_v25  ;;  %v1765_v29 = vpop.permute.xlu0 %1764 }
 0x80a   : > { %v1772_v33 = vmul.f32 %v1765_v29, %v1756_v26 }
 0x80b   : > { %1775 = vst.msk [vmem:[#allocation6 + $0x8] sm:$0xff] %vm792_vm6, %v1773_v28 }
 0x80c   : > { %1774 = vst.msk [vmem:[#allocation6] sm:$0xff] %vm792_vm6, %v1772_v33  ;;  %1856 = vrot.lane.b32.xlu1 %v1851_v32, %s3085_s3 }
 0x872   : > { %v1797_v35 = vpop.permute.xlu0 %1796 }
 0x873   : > { %1803 = vst.msk [vmem:[#allocation6] sm:$0xff] %vm1802_vm9, %v1797_v35 }
 0x876   : > { %v1799_v36 = vpop.permute.xlu1 %1798  ;;  %v1826_v30 = vpop.permute.xlu0 %1825 }
 0x877   : > { %1804 = vst.msk [vmem:[#allocation6 + $0x8] sm:$0xff] %vm1802_vm9, %v1799_v36 }
 0x878   : > { %1832 = vst.msk [vmem:[#allocation6] sm:$0xff] %vm1831_vm10, %v1826_v30 }
 0x87a   : > { %v1828_v34 = vpop.permute.xlu1 %1827  ;;  %v1855_v38 = vpop.permute.xlu0 %1854 }
 0x87b   : > { %1833 = vst.msk [vmem:[#allocation6 + $0x8] sm:$0xff] %vm1831_vm10, %v1828_v34 }
 0x87c   : > { %1861 = vst.msk [vmem:[#allocation6] sm:$0xff] %vm1860_vm11, %v1855_v38 }
 0x87e   : > { %v1857_v43 = vpop.permute.xlu1 %1856 }
 0x87f   : > { %1862 = vst.msk [vmem:[#allocation6 + $0x8] sm:$0xff] %vm1860_vm11, %v1857_v43 }
 0x883   : > { %v1863_v44 = vld [vmem:[#allocation6] sm:$0xff] }
 0x884   : > { %2365 = vmatprep.mubr.msk.f32.mxu0 %vm1880_vm12, %v1863_v44 }
 0x886   : > { %v1864_v45 = vld [vmem:[#allocation6 + $0x8] sm:$0xff] }
 0x887   : > { %2366 = vmatmul.mubr.msk.f32.vlgmr.msra.gmra.mrb[0].mxu0 %vm1880_vm12, %v1864_v45 }
 0x95a   : > { %v2367_v48 = vpop.f32.mrb[0].mxu0 }
 0x95b   : > { %v1959_v40 = vadd.f32 %v2367_v48, %v2211_v46  ;;  %v1953_v49 = vpop.f32.mrb[1].mxu0 }
 0x95c   : > { %v1954_v31 = vadd.f32 %v2211_v46, %v1953_v49 }
 0x95d   : > { %1963 = vst.msk [vmem:[%s3567_s28 + $0x8] sm:$0xff] %vm716_vm5, %v1959_v40 }
 0x95e   : > { %1962 = vst.msk [vmem:[%s3567_s28] sm:$0xff] %vm716_vm5, %v1954_v31 }
 0x95f PF: > { %s3944_s0 = sld [smem:[#allocation33_spill]]  ;;  %s3945_s6 = sld [smem:[#allocation34_spill]] }
 0x960   : > { %s1980_s18 = sshll.u32 %s3567_s28, 4  ;;  %s3946_s25 = sld [smem:[#allocation48_spill]]  ;;  %s3775_s18 = int_to_ptr.vmem [resolvable:$true] %s1980_s18 }
 0x961   : > { %s1965_s21 = scalar_lea.sflag [#allocation9], %s3532_s20  ;;  %s2896_s1 = scalar_lea.vmem %s3775_s18, 256 }
 0x962   : > { %p2897_p3 = scmp.ne.s32.totalorder %s3775_s18, %s2896_s1  ;;  %p3947_p0 = scmp.ne.s32.totalorder %s3909_s27, 0 }
 0x963   : > { %s3086_s4 = smov [#allocation21]  }
 0x964   : > { %p2898_p6 = pnand %p2897_p3, %p3947_p0  ;;  %s2900_s28 = sshll.u32 %s3086_s4, 4  ;;  %s2901_s28 = int_to_ptr.vmem [resolvable:$false] %s2900_s28 }
 0x965   : > { %s2215_s15 = sshll.u32 %s3944_s0, 1  ;;  %s2216_s11 = sshll.u32 %s3945_s6, 2 }
 0x966   : > { %s1977_s26 = sadd.s32 %s2216_s11, %s2215_s15  ;;  %p2899_p10 = pneg %p2898_p6 }
 0x967   : > { %s2217_s29 = sshll.u32 %s1977_s26, 7  ;;  %s2902_s5 = scalar_lea.vmem %s2901_s28, 512 }
 0x968   : > { %s3780_s8 = scalar_lea.hbm %s3946_s25, %s2217_s29  ;;  %p2903_p13 = scmp.lt.s32.totalorder %s3775_s18, %s2901_s28 }
 0x969   : > { %p2904_p2 = scmp.lt.s32.totalorder %s2902_s5, %s2896_s1 }
 0x96b   : > { %p2905_p5 = por %p2904_p2, %p2903_p13 }
 0x96d   : > { %p2906_p9 = pnand %p2905_p5, %p2899_p10 }
 0x96f   : > { %2909 = shalt.err (!%p2906_p9)
}
 0x970   : > { %s2910_s24 = scalar_lea.hbm %s3780_s8, 256  ;;  %s2914_s0 = scalar_lea.hbm %s3946_s25, 1024 }
 0x971   : > { %p2911_p7 = scmp.ne.s32.totalorder %s3780_s8, %s2910_s24  ;;  %p2915_p1 = scmp.lt.u32.totalorder %s3780_s8, %s3946_s25 }
 0x972   : > { %p2916_p4 = scmp.lt.u32.totalorder %s2914_s0, %s2910_s24  ;;  %p2918_p3 = scmp.lt.u32.totalorder %s2910_s24, %s3780_s8 }
 0x973   : > { %p2912_p11 = pnand %p2911_p7, %p3947_p0 }
 0x974   : > { %p2917_p8 = por %p2916_p4, %p2915_p1 }
 0x975   : > { %p2913_p12 = pneg %p2912_p11 }
 0x976   : > { %p2919_p6 = por %p2918_p3, %p2917_p8 }
 0x978   : > { %p2920_p10 = pnand %p2919_p6, %p2913_p12 }
 0x97a   : > { %2923 = shalt.err (!%p2920_p10)
}
 0x97b   : > { %s3087_s11 = smov 128   ;;  %s3088_s26 = smov 8  }
 0x97c   : > { %2436 = dma.vmem_to_hbm [thread:$0]  (%p3947_p0), %s3775_s18, 256, %s3780_s8, %s1965_s21, %s3087_s11, %s3087_s11, %s3088_s26  }
 0x97d PF: > { %s3948_s29 = sld [smem:[#allocation37_spill]]  ;;  %p2481_p13 = scmp.ge.s32.totalorder %s3054_s17, 2 }
 0x97e   : > { %s1995_s2 = sand.u32 1, %s3018_s30  }
 0x97f   : > { %s1996_s12 = scalar_lea.sflag [#allocation9], %s1995_s2 }
 0x983   : > { %p3949_p2 = scmp.ne.s32.totalorder %s3948_s29, 0 }
 0x985   : > { %p2465_p5 = pnand %p2481_p13, %p3949_p2 }
 0x987   : > { %3001 = dma.done.wait (!%p2465_p5), %s1996_s12, 256  }
 0x988   : > { %3003 = vsyncadd (!%p2465_p5), %s1996_s12, 4294967040  ;;  %s30_s17 = sadd.s32 1, %s3054_s17   ;;  %s3951_s27 = sld [smem:[#allocation30_spill]] }
 0x989   : > { %p3811_p9 = scmp.ge.s32.totalorder %s30_s17, 14   ;;  %s3952_s28 = sld [smem:[#allocation31_spill]] }
 0x98a   : > { %s3953_s12 = sld [smem:[#allocation35_spill]]  ;;  %s3954_s20 = sld [smem:[#allocation38_spill]] }
 0x98b   : > { %s3955_s15 = sld [smem:[#allocation39_spill]]  ;;  %s3956_s29 = smov %s3975_s22 }
 0x98c   : > { %s3957_s30 = smov %s3022_s9  ;;  %s3958_s9 = smov %s3026_s10 }
 0x98d   : > { %s3959_s10 = smov %s3487_s13  ;;  %s3960_s11 = smov %s3042_s14 }
 0x98e   : > { %s3961_s13 = smov %s3050_s16  ;;  %s3963_s16 = smov %s3973_s23 }
 0x98f   :  { %29 = sbr.rel (!%p3811_p9) target bundleno = 25 (0x19), region = 157 }
 0x990   : > { %s3962_s14 = smov %s3954_s20 }
 0x996   :  { %2001 = vsyncpa [#allocation8], 1 }
 0x997   :  { %2003 = vsyncpa [#allocation8 + $0x1], 1 }
 0x998   :  { %2004 = vsyncpa [#allocation11], 1 }
 0x999   :  { %2006 = vsyncpa [#allocation11 + $0x1], 1 }
 0x99a   :  { %2007 = vsyncpa [#allocation14], 1 }
 0x99b   :  { %2008 = vsyncpa [#allocation17], 1 }
 0x99c   :  { %2009 = vsyncpa [#allocation20], 1 }
 0x99d   :  { %2010 = vsyncpa [#allocation9], 1 }
 0x99e   :  { %2012 = vsyncpa [#allocation9 + $0x1], 1 }

</bundles_post_ra>
